<compile_context>
chip_gen: v7x
topology: tpu7x:2x2x1
jax: 0.10.0
libtpu: 0.0.40
codegen_flags: <defaults>
</compile_context>

<pallas_src>
import functools

import jax
import jax.numpy as jnp
from jax import lax
from jax.experimental import pallas as pl
from jax.experimental.pallas import tpu as pltpu


def mlp_kernel(x_ref, w1_ref, b1_ref, wh_ref, bh_ref, w5_ref, b5_ref, o_ref):
    # x_ref : (3, bn)   f32   -- batch on the lane axis (lane-dense)
    # w1_ref: (H, 3)    f32,  b1_ref: (H, 1) f32     layer 1 (VPU path, K=3)
    # wh_ref: (3, H, H) bf16, bh_ref: (3, H, 1) f32  hidden layers 2-4 (stacked)
    # w5_ref: (2, H)    bf16, b5_ref: (2, 1) f32     output layer
    # o_ref : (2, bn)   f32   -- lane-dense output
    x = x_ref[...]

    # Layer 1: contraction dim is only 3 -> three broadcast FMAs on the VPU.
    # Kept in f32 (v5e has no bf16 VPU); cast to bf16 once after the ReLU so the
    # inter-layer activation footprint is halved.
    h = b1_ref[...] + w1_ref[:, 0:1] * x[0:1, :]
    h = h + w1_ref[:, 1:2] * x[1:2, :]
    h = h + w1_ref[:, 2:3] * x[2:3, :]
    h = jnp.maximum(h, 0.0).astype(jnp.bfloat16)

    # Hidden layers 2-4: bf16 MXU matmuls with f32 accumulation, f32 bias + ReLU
    # on the VPU, bf16 carry between layers.
    def body(i, h):
        z = jnp.dot(wh_ref[i], h, preferred_element_type=jnp.float32) + bh_ref[i]
        return jnp.maximum(z, 0.0).astype(jnp.bfloat16)

    h = lax.fori_loop(0, 3, body, h, unroll=True)

    # Output layer (2 logits), lane-dense f32 store.
    out = jnp.dot(w5_ref[...], h, preferred_element_type=jnp.float32) + b5_ref[...]
    o_ref[...] = out.astype(o_ref.dtype)


def _round_up(x, m):
    return ((x + m - 1) // m) * m


def _pick_block_n(n):
    # Large tiles amortize the ~0.35us/step overhead; the cdiv(n, 2) term keeps the
    # "parallel" grid >= 2 (even for n <= 16K) so both v7x TensorCores get work;
    # the 8192 cap keeps per-step VMEM (~6-8 MB) well inside every generation's budget.
    return min(8192, _round_up(pl.cdiv(n, 2), 256))


@functools.partial(jax.jit, static_argnames=("block_n",))
def torus_classifier_forward_fm(x_fm, params, *, block_n=None):
    """Feature-major forward: x_fm (3, N) f32 -> logits (2, N) f32.

    Preferred entry point (no boundary transpose / pad passes). Tail blocks of a
    non-divisible N are handled by Pallas output-write masking.
    """
    fin, N = x_fm.shape
    if block_n is None:
        block_n = _pick_block_n(N)
    block_n = _round_up(int(block_n), 256)
    grid = (pl.cdiv(N, block_n),)

    def full_spec(shape):
        # Entire (tiny) parameter array resident in VMEM for every grid step.
        return pl.BlockSpec(shape, lambda i, nd=len(shape): (0,) * nd)

    grid_spec = pltpu.PrefetchScalarGridSpec(
        num_scalar_prefetch=0,
        grid=grid,
        in_specs=[
            pl.BlockSpec((fin, block_n), lambda i: (0, i)),   # x tile, lane-dense
            full_spec(params["w1"].shape), full_spec(params["b1"].shape),
            full_spec(params["wh"].shape), full_spec(params["bh"].shape),
            full_spec(params["w5"].shape), full_spec(params["b5"].shape),
        ],
        out_specs=pl.BlockSpec((2, block_n), lambda i: (0, i)),
    )

    return pl.pallas_call(
        mlp_kernel,
        out_shape=jax.ShapeDtypeStruct((2, N), jnp.float32),
        grid_spec=grid_spec,
        compiler_params=pltpu.CompilerParams(
            dimension_semantics=("parallel",),
            vmem_limit_bytes=32 * 1024 * 1024,   # headroom on v5e; budgeted for v7x
        ),
    )(x_fm,
      params["w1"], params["b1"],
      params["wh"], params["bh"],
      params["w5"], params["b5"])


def torus_classifier_forward(x, params, *, block_n=None):
    """PyTorch-compatible forward: x (N, 3) f32 -> (N, 2) f32.

    For large N, keep activations feature-major upstream and call
    torus_classifier_forward_fm directly to avoid the two boundary transposes.
    """
    return torus_classifier_forward_fm(x.T, params, block_n=block_n).T


def init_params(key, hidden_size=64):
    """PyTorch nn.Linear-style init (uniform +/- 1/sqrt(fan_in)).
    Weights stored as (out_features, in_features); hidden layers stacked;
    MXU-facing weights in bf16, biases (and the VPU-path layer-1 weight) in f32."""
    H = hidden_size

    def linear(k, fan_in, fan_out):
        kw, kb = jax.random.split(k)
        bound = 1.0 / jnp.sqrt(fan_in)
        w = jax.random.uniform(kw, (fan_out, fan_in), jnp.float32, -bound, bound)
        b = jax.random.uniform(kb, (fan_out, 1), jnp.float32, -bound, bound)
        return w, b

    keys = jax.random.split(key, 5)
    w1, b1 = linear(keys[0], 3, H)
    wh, bh = [], []
    for k in keys[1:4]:
        w, b = linear(k, H, H)
        wh.append(w)
        bh.append(b)
    w5, b5 = linear(keys[4], H, 2)

    return {
        "w1": w1, "b1": b1,                            # (H,3) f32, (H,1) f32
        "wh": jnp.stack(wh).astype(jnp.bfloat16),      # (3,H,H) bf16
        "bh": jnp.stack(bh),                           # (3,H,1) f32
        "w5": w5.astype(jnp.bfloat16),                 # (2,H) bf16
        "b5": b5,                                      # (2,1) f32
    }


def reference_forward(x, params):
    """Pure-JAX f32 reference with PyTorch semantics (x @ W.T + b).

    Uses the same (pre-quantized) bf16 weights upcast to f32; the kernel
    additionally carries inter-layer activations in bf16, which the tolerance
    below absorbs (intentional tradeoff at H=64, depth 4)."""
    h = jnp.maximum(x @ params["w1"].T + params["b1"].T, 0.0)
    wh = params["wh"].astype(jnp.float32)
    bh = params["bh"]
    for i in range(3):
        h = jnp.maximum(h @ wh[i].T + bh[i].T, 0.0)
    return h @ params["w5"].astype(jnp.float32).T + params["b5"].T


def _check(x, params):
    out = jax.block_until_ready(torus_classifier_forward(x, params))
    ref = reference_forward(x, params)
    assert out.shape == (x.shape[0], 2)
    max_err = float(jnp.max(jnp.abs(out - ref)))
    # Tolerance rationale: bf16 MXU weights + bf16 inter-layer activations vs. a
    # f32-activation reference; logits are O(1), so this still catches structural bugs.
    assert jnp.allclose(out, ref, atol=1e-1, rtol=5e-2), (
        f"mismatch vs reference, max abs diff {max_err:.3e}")


if __name__ == "__main__":
    key = jax.random.PRNGKey(0)
    kx, kp = jax.random.split(key)

    params = init_params(kp, hidden_size=64)

    # Case 1: N divisible by the auto block (block_n=512 -> even 2-step grid).
    x1 = jax.random.normal(kx, (1024, 3), jnp.float32)
    _check(x1, params)

    # Case 2: ragged N (not a multiple of block_n) -> exercises Pallas tail-block
    # output masking in place of the old wrapper-side jnp.pad.
    x2 = jax.random.normal(jax.random.PRNGKey(1), (777, 3), jnp.float32)
    _check(x2, params)

    print("KERNEL_OK")
</pallas_src>

<mosaic_0001>
module attributes {stable_mosaic.version = 11 : i64} {
  func.func @mlp_kernel(%arg0: i32, %arg1: memref<3x512xf32, #tpu.memory_space<vmem>>, %arg2: memref<64x3xf32, #tpu.memory_space<vmem>>, %arg3: memref<64x1xf32, #tpu.memory_space<vmem>>, %arg4: memref<3x64x64xbf16, #tpu.memory_space<vmem>>, %arg5: memref<3x64x1xf32, #tpu.memory_space<vmem>>, %arg6: memref<2x64xbf16, #tpu.memory_space<vmem>>, %arg7: memref<2x1xf32, #tpu.memory_space<vmem>>, %arg8: memref<2x512xf32, #tpu.memory_space<vmem>>) attributes {dimension_semantics = [#tpu.dimension_semantics<parallel>], iteration_bounds = array<i64: 2>, scalar_prefetch = 0 : i64, scratch_operands = 0 : i64, tpu.core_type = #tpu.core_type<tc>, window_params = [{transform_indices = @transform_0, window_bounds = array<i64: 3, 512>}, {pipeline_mode = #tpu.pipeline_mode<synchronous>, transform_indices = @transform_1, window_bounds = array<i64: 64, 3>}, {pipeline_mode = #tpu.pipeline_mode<synchronous>, transform_indices = @transform_2, window_bounds = array<i64: 64, 1>}, {pipeline_mode = #tpu.pipeline_mode<synchronous>, transform_indices = @transform_3, window_bounds = array<i64: 3, 64, 64>}, {pipeline_mode = #tpu.pipeline_mode<synchronous>, transform_indices = @transform_4, window_bounds = array<i64: 3, 64, 1>}, {pipeline_mode = #tpu.pipeline_mode<synchronous>, transform_indices = @transform_5, window_bounds = array<i64: 2, 64>}, {pipeline_mode = #tpu.pipeline_mode<synchronous>, transform_indices = @transform_6, window_bounds = array<i64: 2, 1>}, {transform_indices = @transform_7, window_bounds = array<i64: 2, 512>}]} {
    %c0 = arith.constant 0 : index
    %c0_0 = arith.constant 0 : index
    %0 = vector.load %arg1[%c0, %c0_0] : memref<3x512xf32, #tpu.memory_space<vmem>>, vector<3x512xf32>
    %c0_1 = arith.constant 0 : index
    %c0_2 = arith.constant 0 : index
    %1 = vector.load %arg3[%c0_1, %c0_2] : memref<64x1xf32, #tpu.memory_space<vmem>>, vector<64x1xf32>
    %c0_3 = arith.constant 0 : index
    %c0_4 = arith.constant 0 : index
    %2 = vector.load %arg2[%c0_3, %c0_4] : memref<64x3xf32, #tpu.memory_space<vmem>>, vector<64x1xf32>
    %3 = vector.extract_strided_slice %0 {offsets = [0, 0], sizes = [1, 512], strides = [1, 1]} : vector<3x512xf32> to vector<1x512xf32>
    %4 = vector.broadcast %2 : vector<64x1xf32> to vector<64x512xf32>
    %5 = vector.broadcast %3 : vector<1x512xf32> to vector<64x512xf32>
    %6 = arith.mulf %4, %5 : vector<64x512xf32>
    %7 = vector.broadcast %1 : vector<64x1xf32> to vector<64x512xf32>
    %8 = arith.addf %7, %6 : vector<64x512xf32>
    %c0_5 = arith.constant 0 : index
    %c1 = arith.constant 1 : index
    %9 = vector.load %arg2[%c0_5, %c1] : memref<64x3xf32, #tpu.memory_space<vmem>>, vector<64x1xf32>
    %10 = vector.extract_strided_slice %0 {offsets = [1, 0], sizes = [1, 512], strides = [1, 1]} : vector<3x512xf32> to vector<1x512xf32>
    %11 = vector.broadcast %9 : vector<64x1xf32> to vector<64x512xf32>
    %12 = vector.broadcast %10 : vector<1x512xf32> to vector<64x512xf32>
    %13 = arith.mulf %11, %12 : vector<64x512xf32>
    %14 = arith.addf %8, %13 : vector<64x512xf32>
    %c0_6 = arith.constant 0 : index
    %c2 = arith.constant 2 : index
    %15 = vector.load %arg2[%c0_6, %c2] : memref<64x3xf32, #tpu.memory_space<vmem>>, vector<64x1xf32>
    %16 = vector.extract_strided_slice %0 {offsets = [2, 0], sizes = [1, 512], strides = [1, 1]} : vector<3x512xf32> to vector<1x512xf32>
    %17 = vector.broadcast %15 : vector<64x1xf32> to vector<64x512xf32>
    %18 = vector.broadcast %16 : vector<1x512xf32> to vector<64x512xf32>
    %19 = arith.mulf %17, %18 : vector<64x512xf32>
    %20 = arith.addf %14, %19 : vector<64x512xf32>
    %cst = arith.constant 0.000000e+00 : f32
    %21 = vector.broadcast %cst : f32 to vector<64x512xf32>
    %22 = arith.maximumf %20, %21 : vector<64x512xf32>
    %23 = arith.truncf %22 : vector<64x512xf32> to vector<64x512xbf16>
    %c0_i32 = arith.constant 0 : i32
    %24 = arith.index_cast %c0_i32 : i32 to index
    %c0_7 = arith.constant 0 : index
    %c0_8 = arith.constant 0 : index
    %25 = vector.load %arg4[%24, %c0_7, %c0_8] : memref<3x64x64xbf16, #tpu.memory_space<vmem>>, vector<1x64x64xbf16>
    %26 = vector.shape_cast %25 : vector<1x64x64xbf16> to vector<64x64xbf16>
    %cst_9 = arith.constant dense<0.000000e+00> : vector<64x512xf32>
    %27 = tpu.matmul %26, %23, %cst_9 {dimension_numbers = #tpu.dot_dimension_numbers<[1], [0], [0], [1], [0, 0, 1, 1], [], []>} : vector<64x64xbf16>, vector<64x512xbf16>, vector<64x512xf32> -> vector<64x512xf32>
    %28 = arith.index_cast %c0_i32 : i32 to index
    %c0_10 = arith.constant 0 : index
    %c0_11 = arith.constant 0 : index
    %29 = vector.load %arg5[%28, %c0_10, %c0_11] : memref<3x64x1xf32, #tpu.memory_space<vmem>>, vector<1x64x1xf32>
    %30 = vector.shape_cast %29 : vector<1x64x1xf32> to vector<64x1xf32>
    %31 = vector.broadcast %30 : vector<64x1xf32> to vector<64x512xf32>
    %32 = arith.addf %27, %31 : vector<64x512xf32>
    %cst_12 = arith.constant 0.000000e+00 : f32
    %33 = vector.broadcast %cst_12 : f32 to vector<64x512xf32>
    %34 = arith.maximumf %32, %33 : vector<64x512xf32>
    %35 = arith.truncf %34 : vector<64x512xf32> to vector<64x512xbf16>
    %c1_i32 = arith.constant 1 : i32
    %36 = arith.index_cast %c1_i32 : i32 to index
    %c0_13 = arith.constant 0 : index
    %c0_14 = arith.constant 0 : index
    %37 = vector.load %arg4[%36, %c0_13, %c0_14] : memref<3x64x64xbf16, #tpu.memory_space<vmem>>, vector<1x64x64xbf16>
    %38 = vector.shape_cast %37 : vector<1x64x64xbf16> to vector<64x64xbf16>
    %cst_15 = arith.constant dense<0.000000e+00> : vector<64x512xf32>
    %39 = tpu.matmul %38, %35, %cst_15 {dimension_numbers = #tpu.dot_dimension_numbers<[1], [0], [0], [1], [0, 0, 1, 1], [], []>} : vector<64x64xbf16>, vector<64x512xbf16>, vector<64x512xf32> -> vector<64x512xf32>
    %40 = arith.index_cast %c1_i32 : i32 to index
    %c0_16 = arith.constant 0 : index
    %c0_17 = arith.constant 0 : index
    %41 = vector.load %arg5[%40, %c0_16, %c0_17] : memref<3x64x1xf32, #tpu.memory_space<vmem>>, vector<1x64x1xf32>
    %42 = vector.shape_cast %41 : vector<1x64x1xf32> to vector<64x1xf32>
    %43 = vector.broadcast %42 : vector<64x1xf32> to vector<64x512xf32>
    %44 = arith.addf %39, %43 : vector<64x512xf32>
    %cst_18 = arith.constant 0.000000e+00 : f32
    %45 = vector.broadcast %cst_18 : f32 to vector<64x512xf32>
    %46 = arith.maximumf %44, %45 : vector<64x512xf32>
    %47 = arith.truncf %46 : vector<64x512xf32> to vector<64x512xbf16>
    %c2_i32 = arith.constant 2 : i32
    %48 = arith.index_cast %c2_i32 : i32 to index
    %c0_19 = arith.constant 0 : index
    %c0_20 = arith.constant 0 : index
    %49 = vector.load %arg4[%48, %c0_19, %c0_20] : memref<3x64x64xbf16, #tpu.memory_space<vmem>>, vector<1x64x64xbf16>
    %50 = vector.shape_cast %49 : vector<1x64x64xbf16> to vector<64x64xbf16>
    %cst_21 = arith.constant dense<0.000000e+00> : vector<64x512xf32>
    %51 = tpu.matmul %50, %47, %cst_21 {dimension_numbers = #tpu.dot_dimension_numbers<[1], [0], [0], [1], [0, 0, 1, 1], [], []>} : vector<64x64xbf16>, vector<64x512xbf16>, vector<64x512xf32> -> vector<64x512xf32>
    %52 = arith.index_cast %c2_i32 : i32 to index
    %c0_22 = arith.constant 0 : index
    %c0_23 = arith.constant 0 : index
    %53 = vector.load %arg5[%52, %c0_22, %c0_23] : memref<3x64x1xf32, #tpu.memory_space<vmem>>, vector<1x64x1xf32>
    %54 = vector.shape_cast %53 : vector<1x64x1xf32> to vector<64x1xf32>
    %55 = vector.broadcast %54 : vector<64x1xf32> to vector<64x512xf32>
    %56 = arith.addf %51, %55 : vector<64x512xf32>
    %cst_24 = arith.constant 0.000000e+00 : f32
    %57 = vector.broadcast %cst_24 : f32 to vector<64x512xf32>
    %58 = arith.maximumf %56, %57 : vector<64x512xf32>
    %59 = arith.truncf %58 : vector<64x512xf32> to vector<64x512xbf16>
    %c3_i32 = arith.constant 3 : i32
    %c0_25 = arith.constant 0 : index
    %c0_26 = arith.constant 0 : index
    %60 = vector.load %arg6[%c0_25, %c0_26] : memref<2x64xbf16, #tpu.memory_space<vmem>>, vector<2x64xbf16>
    %cst_27 = arith.constant dense<0.000000e+00> : vector<2x512xf32>
    %61 = tpu.matmul %60, %59, %cst_27 {dimension_numbers = #tpu.dot_dimension_numbers<[1], [0], [0], [1], [0, 0, 1, 1], [], []>} : vector<2x64xbf16>, vector<64x512xbf16>, vector<2x512xf32> -> vector<2x512xf32>
    %c0_28 = arith.constant 0 : index
    %c0_29 = arith.constant 0 : index
    %62 = vector.load %arg7[%c0_28, %c0_29] : memref<2x1xf32, #tpu.memory_space<vmem>>, vector<2x1xf32>
    %63 = vector.broadcast %62 : vector<2x1xf32> to vector<2x512xf32>
    %64 = arith.addf %61, %63 : vector<2x512xf32>
    %c0_30 = arith.constant 0 : index
    %c0_31 = arith.constant 0 : index
    %65 = vector.load %arg8[%c0_30, %c0_31] : memref<2x512xf32, #tpu.memory_space<vmem>>, vector<2x512xf32>
    tpu.vector_store %arg8[%c0_30, %c0_31], %64 {strides = array<i32>} : memref<2x512xf32, #tpu.memory_space<vmem>>, vector<2x512xf32>,
    return
  }
  func.func @transform_0(%arg0: i32) -> (i32, i32) {
    %c0_i32 = arith.constant 0 : i32
    %c0_i32_0 = arith.constant 0 : i32
    return %c0_i32, %arg0 : i32, i32
  }
  func.func @transform_1(%arg0: i32) -> (i32, i32) {
    %c0_i32 = arith.constant 0 : i32
    %c0_i32_0 = arith.constant 0 : i32
    %c0_i32_1 = arith.constant 0 : i32
    return %c0_i32, %c0_i32_0 : i32, i32
  }
  func.func @transform_2(%arg0: i32) -> (i32, i32) {
    %c0_i32 = arith.constant 0 : i32
    %c0_i32_0 = arith.constant 0 : i32
    %c0_i32_1 = arith.constant 0 : i32
    return %c0_i32, %c0_i32_0 : i32, i32
  }
  func.func @transform_3(%arg0: i32) -> (i32, i32, i32) {
    %c0_i32 = arith.constant 0 : i32
    %c0_i32_0 = arith.constant 0 : i32
    %c0_i32_1 = arith.constant 0 : i32
    %c0_i32_2 = arith.constant 0 : i32
    return %c0_i32, %c0_i32_0, %c0_i32_1 : i32, i32, i32
  }
  func.func @transform_4(%arg0: i32) -> (i32, i32, i32) {
    %c0_i32 = arith.constant 0 : i32
    %c0_i32_0 = arith.constant 0 : i32
    %c0_i32_1 = arith.constant 0 : i32
    %c0_i32_2 = arith.constant 0 : i32
    return %c0_i32, %c0_i32_0, %c0_i32_1 : i32, i32, i32
  }
  func.func @transform_5(%arg0: i32) -> (i32, i32) {
    %c0_i32 = arith.constant 0 : i32
    %c0_i32_0 = arith.constant 0 : i32
    %c0_i32_1 = arith.constant 0 : i32
    return %c0_i32, %c0_i32_0 : i32, i32
  }
  func.func @transform_6(%arg0: i32) -> (i32, i32) {
    %c0_i32 = arith.constant 0 : i32
    %c0_i32_0 = arith.constant 0 : i32
    %c0_i32_1 = arith.constant 0 : i32
    return %c0_i32, %c0_i32_0 : i32, i32
  }
  func.func @transform_7(%arg0: i32) -> (i32, i32) {
    %c0_i32 = arith.constant 0 : i32
    %c0_i32_0 = arith.constant 0 : i32
    return %c0_i32, %arg0 : i32, i32
  }
}

</mosaic_0001>

<bundles_post_ra>
// kernel: torus_classifier_forward_fm.1
= control target key start
LH: loop header
LB: loop body
LE: loop exit
PB: predicated region body
PF: predicated region fallthrough
CT: control target
= control target key end

     0   :  { %12 = vsyncpa [#allocation3], 0  ;;  %s2675_s0 = inlined_call_operand.vmem [shape: f32[3,1024], index: 0, kind: input, shape index: {}]   ;;  %s2676_s1 = inlined_call_operand.vmem [shape: f32[64,3], index: 1, kind: input, shape index: {}]   ;;  %s2677_s2 = inlined_call_operand.vmem [shape: f32[64,1], index: 2, kind: input, shape index: {}]   ;;  %s2678_s3 = inlined_call_operand.vmem [shape: bf16[3,64,64], index: 3, kind: input, shape index: {}]   ;;  %s2679_s4 = inlined_call_operand.vmem [shape: f32[3,64,1], index: 4, kind: input, shape index: {}]   ;;  %s2680_s5 = inlined_call_operand.vmem [shape: bf16[2,64], index: 5, kind: input, shape index: {}]   ;;  %s2681_s6 = inlined_call_operand.vmem [shape: f32[2,1], index: 6, kind: input, shape index: {}]   ;;  %s2682_s7 = inlined_call_operand.hbm [shape: f32[2,1024], index: 7, kind: output, shape index: {}]  }
   0x1   :  { %14 = vsyncpa [#allocation3 + $0x1], 0  ;;  %s2100_s24 = smov 0   ;;  %s2102_s25 = smov 0  }
   0x2   :  { %s2104_s26 = smov 0   ;;  %s2106_s27 = smov 0  }
   0x3 LB: > { %s2121_s28 = sadd.s32 4294967295, %s2053_s27   ;;  %s1833_s29 = sadd.s32 4294967294, %s2053_s27   ;;  %s2053_s27 = sphi %s2106_s27, %s2688_s27   ;;  %s2049_s26 = sphi %s2104_s26, %s2687_s26   ;;  %s2045_s25 = sphi %s2102_s25, %s2686_s25   ;;  %s2041_s24 = sphi %s2100_s24, %s2685_s24  }
   0x4   : > { %s2125_s30 = sadd.s32 1, %s2053_s27   ;;  %s179_s8 = sadd.s32 1, %s2049_s26 }
   0x5   : > { %s176_s9 = ssub.s32 %s2053_s27, %s2125_s30  ;;  %p189_p0 = scmp.ne.s32.totalorder %s2049_s26, %s2045_s25 }
   0x6   : > { %p177_p1 = scmp.eq.s32.totalorder %s176_s9, 0  ;;  %p190_p2 = scmp.eq.s32.totalorder %s2121_s28, 1 }
   0x7   : > { %p195_p3 = scmp.ne.s32.totalorder %s2045_s25, %s2041_s24  ;;  %p196_p4 = scmp.eq.s32.totalorder %s1833_s29, 1 }
   0x8   : > { %s2136_s10 = scalar_select %p177_p1, %s2049_s26, %s179_s8  }
   0x9   : > { %p2138_p5 = por %p190_p2, %p189_p0  ;;  %p2142_p6 = por %p196_p4, %p195_p3 }
   0xa   : > { %p1836_p7 = scmp.ge.s32.totalorder %s2053_s27, 1  ;;  %p241_p8 = scmp.lt.s32.totalorder %s2053_s27, 3 }
   0xc   : > { %p242_p9 = pnand %p1836_p7, %p241_p8 }
   0xd   : > { %v291_v0 = vld [vmem:[%s2676_s1] sm:$0xff] (!%p242_p9)  ;;  %v2055_v2 = vmov (!%p242_p9), 0   ;;  %v292_v3 = vld [vmem:[%s2676_s1 + $0x8] sm:$0xff] (!%p242_p9)  ;;  %v294_v5 = vld [vmem:[%s2676_s1 + $0x18] sm:$0xff] (!%p242_p9)  ;;  %v2056_v7 = vmov (!%p242_p9), 1   ;;  %v2057_v11 = vmov (!%p242_p9), 2   ;;  %v341_v26 = vlaneseq (!%p242_p9) }
   0xe   : > { %245 = sbr.rel (%p242_p9) target bundleno = 1223 (0x4c7), region = 48  ;;  %v283_v1 = vld [vmem:[%s2677_s2] sm:$0xff] (!%p242_p9)  ;;  %1960 = vset.pattern.permute.xlu1 (!%p242_p9), %v2055_v2  ;;  %1959 = vset.pattern.permute.xlu0 (!%p242_p9), %v2055_v2  ;;  %v284_v4 = vld [vmem:[%s2677_s2 + $0x8] sm:$0xff] (!%p242_p9)  ;;  %v285_v6 = vld [vmem:[%s2677_s2 + $0x10] sm:$0xff] (!%p242_p9)  ;;  %s1838_s17 = sshll.u32 (!%p242_p9), %s2121_s28, 2  ;;  %vm869_vm0 = vcmask (!%p242_p9), 523264  }
   0xf   : > { %301 = vperm.xlu0 (!%p242_p9), %1959, %v291_v0   ;;  %411 = vperm.xlu1 (!%p242_p9), %1960, %v283_v1   ;;  %v293_v8 = vld [vmem:[%s2676_s1 + $0x10] sm:$0xff] (!%p242_p9)  ;;  %v296_v9 = vld [vmem:[%s2676_s1 + $0x28] sm:$0xff] (!%p242_p9)  ;;  %v287_v10 = vld [vmem:[%s2677_s2 + $0x20] sm:$0xff] (!%p242_p9)  ;;  %p274_p10 = scmp.lt.s32.totalorder (!%p242_p9), %s1838_s17, 7  ;;  %v2238_v31 = vshrl.u32 (!%p242_p9), %v341_v26, 7  ;;  %s270_s14 = sand.u32 (!%p242_p9), 1, %s2045_s25  }
  0x10   : > { %914 = vmatprep.mubr.bf16.mxu0 (!%p242_p9), %v2055_v2  ;;  %987 = vmatprep.mubr.bf16.mxu1 (!%p242_p9), %v2055_v2  ;;  %v298_v12 = vld [vmem:[%s2676_s1 + $0x38] sm:$0xff] (!%p242_p9)  ;;  %v289_v13 = vld [vmem:[%s2677_s2 + $0x30] sm:$0xff] (!%p242_p9)  ;;  %v295_v15 = vld [vmem:[%s2676_s1 + $0x20] sm:$0xff] (!%p242_p9)  ;;  %s1837_s15 = sshll.u32 (!%p242_p9), %s270_s14, 3  ;;  %s1760_s23 = scalar_lea.sflag (!%p242_p9), [#allocation3], %s270_s14 }
  0x11   : > { %v286_v14 = vld [vmem:[%s2677_s2 + $0x18] sm:$0xff] (!%p242_p9)  ;;  %v297_v16 = vld [vmem:[%s2676_s1 + $0x30] sm:$0xff] (!%p242_p9)  ;;  %v288_v17 = vld [vmem:[%s2677_s2 + $0x28] sm:$0xff] (!%p242_p9)  ;;  %v343_v36 = vsub.s32 (!%p242_p9), 0, %v2238_v31  ;;  %v347_v37 = vsub.s32 (!%p242_p9), 4, %v2238_v31  ;;  %v519_v48 = vsub.s32 (!%p242_p9), 5, %v2238_v31 }
  0x12   : > { %v290_v18 = vld [vmem:[%s2677_s2 + $0x38] sm:$0xff] (!%p242_p9)  ;;  %v801_v19 = vld [vmem:[%s2679_s4] sm:$0xff] (!%p242_p9)  ;;  %v802_v20 = vld [vmem:[%s2679_s4 + $0x8] sm:$0xff] (!%p242_p9)  ;;  %v515_v50 = vsub.s32 (!%p242_p9), 1, %v2238_v31  ;;  %v647_v52 = vsub.s32 (!%p242_p9), 2, %v2238_v31  ;;  %v651_v53 = vsub.s32 (!%p242_p9), 6, %v2238_v31 }
  0x13   : > { %306 = vperm.xlu0 (!%p242_p9), %1959, %v292_v3   ;;  %416 = vperm.xlu1 (!%p242_p9), %1960, %v284_v4   ;;  %v803_v21 = vld [vmem:[%s2679_s4 + $0x10] sm:$0xff] (!%p242_p9)  ;;  %v806_v22 = vld [vmem:[%s2679_s4 + $0x28] sm:$0xff] (!%p242_p9)  ;;  %v804_v25 = vld [vmem:[%s2679_s4 + $0x18] sm:$0xff] (!%p242_p9)  ;;  %s272_s18 = scalar_lea.vmem (!%p242_p9), [#allocation2], %s1837_s15 }
  0x14   : > { %v808_v27 = vld [vmem:[%s2679_s4 + $0x38] sm:$0xff] (!%p242_p9)  ;;  %v805_v30 = vld [vmem:[%s2679_s4 + $0x20] sm:$0xff] (!%p242_p9)  ;;  %v1861_v32 = vld [vmem:[%s2679_s4 + $0x48] sm:$0xff] (!%p242_p9)  ;;  %s1774_s19 = sshll.u32 (!%p242_p9), %s272_s18, 4  ;;  %s2635_s19 = int_to_ptr.vmem [resolvable:$true] %s1774_s19 }
  0x15   : > { %s2690_s17 = smov (!%p274_p10, %s1838_s17), 7  ;;  %v807_v35 = vld [vmem:[%s2679_s4 + $0x30] sm:$0xff]  ;;  %v1863_v40 = vld [vmem:[%s2679_s4 + $0x58] sm:$0xff]  ;;  %v1860_v42 = vld [vmem:[%s2679_s4 + $0x40] sm:$0xff] }
  0x16   : > { %s1839_s16 = sshll.u32 %s2690_s17, 2  ;;  %v1865_v49 = vld [vmem:[%s2679_s4 + $0x68] sm:$0xff]  ;;  %v1862_v54 = vld [vmem:[%s2679_s4 + $0x50] sm:$0xff]  ;;  %v1867_v62 = vld [vmem:[%s2679_s4 + $0x78] sm:$0xff] }
  0x17   : > { %316 = vperm.xlu0 %1959, %v294_v5   ;;  %1961 = vset.pattern.permute.xlu1 %v2056_v7  ;;  %s277_s29 = scalar_lea.vmem %s2675_s0, %s1839_s16  ;;  %s1915_s16 = sshll.u32 %s2121_s28, 7 }
  0x18   : > { %486 = vperm.xlu1 %1961, %v292_v3   ;;  %v281_v38 = vld [vmem:[%s277_s29] sm:$0x77]  ;;  %v282_v39 = vld [vmem:[%s277_s29 + $0x8] sm:$0x77]  ;;  %s2633_s22 = scalar_lea.hbm %s2682_s7, %s1915_s16  ;;  %s1991_s29 = scalar_lea.vmem %s2635_s19, 128 }
  0x19   : > { %v344_v43 = vrot.slane %v281_v38, %v343_v36  ;;  %v348_v44 = vrot.slane %v281_v38, %v347_v37  ;;  %v352_v45 = vrot.slane %v282_v39, %v343_v36  ;;  %v356_v47 = vrot.slane %v282_v39, %v347_v37  ;;  %p1992_p11 = scmp.ne.s32.totalorder %s2635_s19, %s1991_s29  ;;  %s2059_s28 = smov [#allocation2]  }
  0x1a   : > { %v520_v59 = vrot.slane %v281_v38, %v519_v48  ;;  %v528_v60 = vrot.slane %v282_v39, %v519_v48  ;;  %v516_v63 = vrot.slane %v281_v38, %v515_v50  ;;  %v656_v4 = vrot.slane %v282_v39, %v647_v52  ;;  %s1995_s17 = sshll.u32 %s2059_s28, 4  ;;  %s1996_s17 = int_to_ptr.vmem [resolvable:$false] %s1995_s17 }
  0x1b   : > { %421 = vperm.xlu0 %1959, %v285_v6   ;;  %v2277_v55 = vrot.slane %v344_v43, %v343_v36  ;;  %v2279_v56 = vrot.slane %v348_v44, %v343_v36  ;;  %v2281_v57 = vrot.slane %v352_v45, %v343_v36  ;;  %v2283_v58 = vrot.slane %v356_v47, %v343_v36  ;;  %v1864_v6 = vld [vmem:[%s2679_s4 + $0x60] sm:$0xff]  ;;  %p1993_p12 = pnand %p1992_p11, %p2138_p5  ;;  %s1997_s8 = scalar_lea.vmem %s1996_s17, 256 }
  0x1c   : > { %1962 = vset.pattern.permute.xlu1 %v2055_v2  ;;  %p1998_p0 = scmp.lt.s32.totalorder %s2635_s19, %s1996_s17  ;;  %p1999_p1 = scmp.lt.s32.totalorder %s1997_s8, %s1991_s29 }
  0x1d   : > { %311 = vperm.xlu1 %1962, %v293_v8   ;;  %p1994_p13 = pneg %p1993_p12 }
  0x1e   : > { %p2000_p2 = por %p1999_p1, %p1998_p0 }
  0x1f   : > { %326 = vperm.xlu0 %1959, %v296_v9  }
  0x20   : > { %p2001_p3 = pnand %p2000_p2, %p1994_p13 }
  0x21   : > { %1963 = vset.pattern.permute.xlu1 %v2057_v11 }
  0x22   : > { %614 = vperm.xlu1 %1963, %v291_v0  }
  0x23   : > { %431 = vperm.xlu0 %1959, %v287_v10   ;;  %v660_v10 = vrot.slane %v282_v39, %v651_v53 }
  0x26   : > { %618 = vperm.xlu1 %1963, %v292_v3   ;;  %v648_v3 = vrot.slane %v281_v38, %v647_v52 }
  0x27   : > { %336 = vperm.xlu0 %1959, %v298_v12  }
  0x2a   : > { %1964 = vset.pattern.permute.xlu1 %v2055_v2 }
  0x2b   : > { %441 = vperm.xlu0 %1959, %v289_v13   ;;  %426 = vperm.xlu1 %1964, %v286_v14   ;;  %v2305_v13 = vrot.slane %v520_v59, %v515_v50  ;;  %v2307_v14 = vrot.slane %v528_v60, %v515_v50 }
  0x2f   : > { %1972 = vset.pattern.permute.xlu0 %v2056_v7  ;;  %1965 = vset.pattern.permute.xlu1 %v2056_v7 }
  0x30   : > { %482 = vperm.xlu0 %1972, %v291_v0   ;;  %494 = vperm.xlu1 %1965, %v294_v5   ;;  %v524_v0 = vrot.slane %v282_v39, %v515_v50 }
  0x34   : > { %490 = vperm.xlu0 %1972, %v293_v8   ;;  %1966 = vset.pattern.permute.xlu1 %v2055_v2 }
  0x35   : > { %321 = vperm.xlu1 %1966, %v295_v15  }
  0x38   : > { %498 = vperm.xlu0 %1972, %v295_v15  }
  0x39   : > { %1967 = vset.pattern.permute.xlu1 %v2057_v11 }
  0x3a   : > { %622 = vperm.xlu1 %1967, %v293_v8  }
  0x3c   : > { %506 = vperm.xlu0 %1972, %v297_v16  }
  0x3e   : > { %626 = vperm.xlu1 %1967, %v294_v5   ;;  %v652_v5 = vrot.slane %v281_v38, %v651_v53  ;;  %v1888_v53 = vld [vmem:[%s2679_s4 + $0x80] sm:$0xff] }
  0x40   : > { %1976 = vset.pattern.permute.xlu0 %v2057_v11  ;;  %v2328_v26 = vrot.slane %v652_v5, %v647_v52 }
  0x41   : > { %642 = vperm.xlu0 %1976, %v298_v12  }
  0x42   : > { %1968 = vset.pattern.permute.xlu1 %v2055_v2 }
  0x43   : > { %436 = vperm.xlu1 %1968, %v288_v17  }
  0x45   : > { %1978 = vset.pattern.permute.xlu0 %v2055_v2 }
  0x46   : > { %821 = vperm.xlu0 %1978, %v803_v21  }
  0x47   : > { %1969 = vset.pattern.permute.xlu1 %v2056_v7 }
  0x48   : > { %502 = vperm.xlu1 %1969, %v296_v9  }
  0x4a   : > { %836 = vperm.xlu0 %1978, %v806_v22  }
  0x4c   : > { %1970 = vset.pattern.permute.xlu1 %v2055_v2 }
  0x4d   : > { %331 = vperm.xlu1 %1970, %v297_v16  }
  0x4e   : > { %846 = vperm.xlu0 %1978, %v808_v27   ;;  %v1866_v27 = vld [vmem:[%s2679_s4 + $0x70] sm:$0xff] }
  0x51   : > { %1971 = vset.pattern.permute.xlu1 %v2057_v11 }
  0x52   : > { %630 = vperm.xlu1 %1971, %v295_v15   ;;  %1101 = vperm.xlu0 %1978, %v1861_v32  }
  0x56   : > { %634 = vperm.xlu1 %1971, %v296_v9   ;;  %1111 = vperm.xlu0 %1978, %v1863_v40   ;;  %v1891_v40 = vld [vmem:[%s2679_s4 + $0x98] sm:$0xff] }
  0x5a   : > { %1973 = vset.pattern.permute.xlu1 %v2055_v2  ;;  %1121 = vperm.xlu0 %1978, %v1865_v49  }
  0x5b   : > { %446 = vperm.xlu1 %1973, %v290_v18  }
  0x5e   : > { %1131 = vperm.xlu0 %1978, %v1867_v62  }
  0x5f   : > { %1974 = vset.pattern.permute.xlu1 %v2056_v7 }
  0x60   : > { %510 = vperm.xlu1 %1974, %v298_v12  }
  0x64   : > { %1975 = vset.pattern.permute.xlu1 %v2057_v11 }
  0x65   : > { %638 = vperm.xlu1 %1975, %v297_v16   ;;  %v1889_v16 = vld [vmem:[%s2679_s4 + $0x88] sm:$0xff] }
  0x66   : > { %1385 = vperm.xlu0 %1978, %v1889_v16  }
  0x69   : > { %1977 = vset.pattern.permute.xlu1 %v2055_v2 }
  0x6a   : > { %811 = vperm.xlu1 %1977, %v801_v19   ;;  %v2316_v19 = vrot.slane %v516_v63, %v515_v50  ;;  %1395 = vperm.xlu0 %1978, %v1891_v40  }
  0x6e   : > { %816 = vperm.xlu1 %1977, %v802_v20   ;;  %v2318_v20 = vrot.slane %v524_v0, %v515_v50 }
  0x72   : > { %826 = vperm.xlu1 %1977, %v804_v25   ;;  %v2326_v25 = vrot.slane %v656_v4, %v647_v52 }
  0x76   : > { %831 = vperm.xlu1 %1977, %v805_v30  }
  0x7a   : > { %841 = vperm.xlu1 %1977, %v807_v35  }
  0x7e   : > { %1096 = vperm.xlu1 %1977, %v1860_v42  }
  0x82   : > { %1106 = vperm.xlu1 %1977, %v1862_v54  }
  0x86   : > { %1116 = vperm.xlu1 %1977, %v1864_v6  }
  0x8a   : > { %1126 = vperm.xlu1 %1977, %v1866_v27  }
  0x8e   : > { %v2221_v23 = vpop.permute.xlu0 %301  ;;  %v2223_v24 = vpop.permute.xlu1 %411  ;;  %1380 = vperm.xlu1 %1977, %v1888_v53  }
  0x8f   : > { %v377_v7 = vmul.f32 %v2277_v55, %v2221_v23  ;;  %v378_v8 = vmul.f32 %v2279_v56, %v2221_v23  ;;  %v379_v9 = vmul.f32 %v2281_v57, %v2221_v23  ;;  %v380_v11 = vmul.f32 %v2283_v58, %v2221_v23 }
  0x90   : > { %v2324_v23 = vrot.slane %v648_v3, %v647_v52  ;;  %v1893_v3 = vld [vmem:[%s2679_s4 + $0xa8] sm:$0xff] }
  0x91   : > { %v2334_v30 = vadd.f32 %v2223_v24, %v377_v7  ;;  %v2337_v32 = vadd.f32 %v2223_v24, %v378_v8  ;;  %v2340_v35 = vadd.f32 %v2223_v24, %v379_v9  ;;  %v2345_v36 = vadd.f32 %v2223_v24, %v380_v11  ;;  %1405 = vperm.xlu0 %1978, %v1893_v3  }
  0x92   : > { %v2231_v28 = vpop.permute.xlu0 %306  ;;  %v2233_v29 = vpop.permute.xlu1 %416 }
  0x93   : > { %v381_v12 = vmul.f32 %v2277_v55, %v2231_v28  ;;  %v382_v17 = vmul.f32 %v2279_v56, %v2231_v28  ;;  %v383_v18 = vmul.f32 %v2281_v57, %v2231_v28  ;;  %v384_v22 = vmul.f32 %v2283_v58, %v2231_v28 }
  0x94   : > { %v2342_v28 = vrot.slane %v660_v10, %v647_v52 }
  0x95   : > { %v453_v37 = vadd.f32 %v2233_v29, %v381_v12  ;;  %v454_v42 = vadd.f32 %v2233_v29, %v382_v17  ;;  %v455_v43 = vadd.f32 %v2233_v29, %v383_v18  ;;  %v456_v48 = vadd.f32 %v2233_v29, %v384_v22  ;;  %v1890_v12 = vld [vmem:[%s2679_s4 + $0x90] sm:$0xff] }
  0x96   : > { %v2246_v33 = vpop.permute.xlu0 %316  ;;  %1390 = vperm.xlu1 %1977, %v1890_v12  }
  0x97   : > { %v2248_v34 = vpop.permute.xlu1 %486  ;;  %v390_v54 = vmul.f32 %v2279_v56, %v2246_v33  ;;  %v391_v60 = vmul.f32 %v2281_v57, %v2246_v33  ;;  %v392_v62 = vmul.f32 %v2283_v58, %v2246_v33 }
  0x98   : > { %v554_v38 = vmul.f32 %v2305_v13, %v2248_v34  ;;  %v556_v39 = vmul.f32 %v2307_v14, %v2248_v34  ;;  %v553_v24 = vmul.f32 %v2316_v19, %v2248_v34  ;;  %v555_v44 = vmul.f32 %v2318_v20, %v2248_v34 }
  0x99   : > { %v389_v34 = vmul.f32 %v2277_v55, %v2246_v33 }
  0x9a   : > { %v2258_v41 = vpop.permute.xlu0 %421  ;;  %v586_v63 = vadd.f32 %v554_v38, %v454_v42  ;;  %v588_v0 = vadd.f32 %v556_v39, %v456_v48  ;;  %v585_v6 = vadd.f32 %v553_v24, %v453_v37  ;;  %v587_v7 = vadd.f32 %v555_v44, %v455_v43  ;;  %v1895_v39 = vld [vmem:[%s2679_s4 + $0xb8] sm:$0xff] }
  0x9b   : > { %1415 = vperm.xlu0 %1978, %v1895_v39  }
  0x9c   : > { %v2263_v46 = vpop.permute.xlu1 %311 }
  0x9d   : > { %v385_v49 = vmul.f32 %v2277_v55, %v2263_v46  ;;  %v386_v50 = vmul.f32 %v2279_v56, %v2263_v46  ;;  %v387_v29 = vmul.f32 %v2281_v57, %v2263_v46  ;;  %v388_v59 = vmul.f32 %v2283_v58, %v2263_v46 }
  0x9e   : > { %v2270_v51 = vpop.permute.xlu0 %326 }
  0x9f   : > { %v457_v46 = vadd.f32 %v2258_v41, %v385_v49  ;;  %v458_v8 = vadd.f32 %v2258_v41, %v386_v50  ;;  %v459_v16 = vadd.f32 %v2258_v41, %v387_v29  ;;  %v460_v17 = vadd.f32 %v2258_v41, %v388_v59 }
  0xa1   : > { %v2285_v61 = vpop.permute.xlu1 %614 }
  0xa2   : > { %v2290_v1 = vpop.permute.xlu0 %431  ;;  %v681_v18 = vmul.f32 %v2324_v23, %v2285_v61  ;;  %v683_v22 = vmul.f32 %v2326_v25, %v2285_v61  ;;  %v682_v41 = vmul.f32 %v2328_v26, %v2285_v61  ;;  %v684_v40 = vmul.f32 %v2342_v28, %v2285_v61 }
  0xa5   : > { %v619_v15 = vpop.permute.xlu1 %618 }
  0xa6   : > { %v2320_v21 = vpop.permute.xlu0 %336  ;;  %v686_v52 = vmul.f32 %v2328_v26, %v619_v15  ;;  %v685_v4 = vmul.f32 %v2324_v23, %v619_v15  ;;  %v688_v5 = vmul.f32 %v2342_v28, %v619_v15  ;;  %v687_v9 = vmul.f32 %v2326_v25, %v619_v15 }
  0xa8   : > { %v2394_v11 = vadd.f32 %v686_v52, %v586_v63  ;;  %v720_v42 = vadd.f32 %v688_v5, %v588_v0  ;;  %v717_v43 = vadd.f32 %v685_v4, %v585_v6  ;;  %v719_v50 = vadd.f32 %v687_v9, %v587_v7  ;;  %v1892_v52 = vld [vmem:[%s2679_s4 + $0xa0] sm:$0xff] }
  0xa9   : > { %1400 = vperm.xlu1 %1977, %v1892_v52  }
  0xaa   : > { %v2361_v45 = vpop.permute.xlu1 %426  ;;  %v2363_v47 = vpop.permute.xlu0 %441  ;;  %v750_v49 = vmax.f32 %v2394_v11, 0.0  ;;  %v752_v9 = vmax.f32 %v720_v42, 0.0 }
  0xab   : > { %v461_v24 = vadd.f32 %v2361_v45, %v389_v34  ;;  %v462_v44 = vadd.f32 %v2361_v45, %v390_v54  ;;  %v464_v53 = vadd.f32 %v2361_v45, %v392_v62  ;;  %v463_v7 = vadd.f32 %v2361_v45, %v391_v60 }
  0xaf   : > { %v483_v33 = vpop.permute.xlu0 %482  ;;  %v495_v10 = vpop.permute.xlu1 %494 }
  0xb0   : > { %v549_v15 = vmul.f32 %v2316_v19, %v483_v33  ;;  %v550_v27 = vmul.f32 %v2305_v13, %v483_v33  ;;  %v551_v37 = vmul.f32 %v2318_v20, %v483_v33  ;;  %v552_v38 = vmul.f32 %v2307_v14, %v483_v33 }
  0xb1   : > { %v561_v29 = vmul.f32 %v2316_v19, %v495_v10  ;;  %v562_v61 = vmul.f32 %v2305_v13, %v495_v10  ;;  %v564_v59 = vmul.f32 %v2307_v14, %v495_v10  ;;  %v749_v33 = vmax.f32 %v717_v43, 0.0 }
  0xb2   : > { %v582_v34 = vadd.f32 %v550_v27, %v2337_v32  ;;  %v584_v54 = vadd.f32 %v552_v38, %v2345_v36  ;;  %v581_v0 = vadd.f32 %v549_v15, %v2334_v30  ;;  %v583_v3 = vadd.f32 %v551_v37, %v2340_v35  ;;  %v1894_v30 = vld [vmem:[%s2679_s4 + $0xb0] sm:$0xff] }
  0xb3   : > { %v491_v48 = vpop.permute.xlu0 %490  ;;  %v751_v32 = vmax.f32 %v719_v50, 0.0  ;;  %v563_v35 = vmul.f32 %v2318_v20, %v495_v10  ;;  %v593_v36 = vadd.f32 %v561_v29, %v461_v24  ;;  %v594_v11 = vadd.f32 %v562_v61, %v462_v44  ;;  %1410 = vperm.xlu1 %1977, %v1894_v30  }
  0xb4   : > { %v2426_v63 = vpop.permute.xlu1 %321  ;;  %v557_v4 = vmul.f32 %v2316_v19, %v491_v48  ;;  %v558_v62 = vmul.f32 %v2305_v13, %v491_v48  ;;  %v559_v5 = vmul.f32 %v2318_v20, %v491_v48  ;;  %v560_v6 = vmul.f32 %v2307_v14, %v491_v48 }
  0xb5   : > { %v596_v12 = vadd.f32 %v564_v59, %v464_v53  ;;  %v714_v27 = vadd.f32 %v682_v41, %v582_v34  ;;  %v716_v37 = vadd.f32 %v684_v40, %v584_v54  ;;  %v713_v38 = vadd.f32 %v681_v18, %v581_v0  ;;  %v1645_v41 = vld [vmem:[%s2681_s6] sm:$0x3] }
  0xb6   : > { %v715_v39 = vadd.f32 %v683_v22, %v583_v3  ;;  %v589_v48 = vadd.f32 %v557_v4, %v457_v46  ;;  %v590_v52 = vadd.f32 %v558_v62, %v458_v8  ;;  %v591_v45 = vadd.f32 %v559_v5, %v459_v16 }
  0xb7   : > { %v592_v60 = vadd.f32 %v560_v6, %v460_v17  ;;  %v746_v40 = vmax.f32 %v714_v27, 0.0  ;;  %v748_v18 = vmax.f32 %v716_v37, 0.0  ;;  %v745_v22 = vmax.f32 %v713_v38, 0.0  ;;  %1648 = vperm.xlu1 %1977, %v1645_v41  }
  0xb8   : > { %v747_v46 = vmax.f32 %v715_v39, 0.0  ;;  %v595_v4 = vadd.f32 %v563_v35, %v463_v7 }
  0xb9   : > { %v623_v15 = vpop.permute.xlu1 %622  ;;  %v778_v53 = vpack.c.bf16 %v750_v49, %v746_v40  ;;  %v780_v29 = vpack.c.bf16 %v752_v9, %v748_v18  ;;  %v777_v61 = vpack.c.bf16 %v749_v33, %v745_v22  ;;  %v397_v40 = vmul.f32 %v2277_v55, %v2270_v51 }
  0xba   : > { %v689_v42 = vmul.f32 %v2324_v23, %v623_v15  ;;  %v690_v43 = vmul.f32 %v2328_v26, %v623_v15  ;;  %v691_v50 = vmul.f32 %v2326_v25, %v623_v15  ;;  %v692_v10 = vmul.f32 %v2342_v28, %v623_v15 }
  0xbb   : > { %v779_v59 = vpack.c.bf16 %v751_v32, %v747_v46  ;;  %882 = vmatprep.subr.bf16.mxu0 %v778_v53  ;;  %955 = vmatprep.subr.bf16.mxu1 %v780_v29  ;;  %v398_v18 = vmul.f32 %v2279_v56, %v2270_v51  ;;  %v399_v46 = vmul.f32 %v2281_v57, %v2270_v51 }
  0xbc   : > { %v722_v16 = vadd.f32 %v690_v43, %v590_v52  ;;  %v724_v17 = vadd.f32 %v692_v10, %v592_v60  ;;  %v721_v24 = vadd.f32 %v689_v42, %v589_v48  ;;  %v723_v44 = vadd.f32 %v691_v50, %v591_v45  ;;  %883 = vmatpush1.bf16.msra.mxu0 %v777_v61 }
  0xbd   : > { %v627_v8 = vpop.permute.xlu1 %626  ;;  %956 = vmatpush1.bf16.msra.mxu1 %v779_v59  ;;  %v393_v45 = vmul.f32 %v2277_v55, %v2426_v63  ;;  %v395_v60 = vmul.f32 %v2281_v57, %v2426_v63  ;;  %v396_v42 = vmul.f32 %v2283_v58, %v2426_v63 }
  0xbe   : > { %v693_v34 = vmul.f32 %v2324_v23, %v627_v8  ;;  %v694_v54 = vmul.f32 %v2328_v26, %v627_v8  ;;  %v695_v0 = vmul.f32 %v2326_v25, %v627_v8  ;;  %v696_v3 = vmul.f32 %v2342_v28, %v627_v8 }
  0xbf   : > { %v754_v33 = vmax.f32 %v722_v16, 0.0  ;;  %v756_v32 = vmax.f32 %v724_v17, 0.0  ;;  %v753_v30 = vmax.f32 %v721_v24, 0.0  ;;  %v755_v15 = vmax.f32 %v723_v44, 0.0 }
  0xc0   : > { %v726_v62 = vadd.f32 %v694_v54, %v594_v11  ;;  %v728_v5 = vadd.f32 %v696_v3, %v596_v12  ;;  %v725_v49 = vadd.f32 %v693_v34, %v593_v36  ;;  %v727_v9 = vadd.f32 %v695_v0, %v595_v4  ;;  %v499_v12 = vpop.permute.xlu0 %498 }
  0xc1   : > { %v394_v36 = vmul.f32 %v2279_v56, %v2426_v63  ;;  %v465_v43 = vadd.f32 %v2290_v1, %v393_v45  ;;  %v565_v10 = vmul.f32 %v2316_v19, %v499_v12  ;;  %v566_v41 = vmul.f32 %v2305_v13, %v499_v12 }
  0xc2   : > { %v437_v6 = vpop.permute.xlu1 %436  ;;  %v758_v27 = vmax.f32 %v726_v62, 0.0  ;;  %v760_v37 = vmax.f32 %v728_v5, 0.0  ;;  %v757_v38 = vmax.f32 %v725_v49, 0.0  ;;  %v759_v39 = vmax.f32 %v727_v9, 0.0 }
  0xc3   : > { %v466_v50 = vadd.f32 %v2290_v1, %v394_v36  ;;  %v400_v63 = vmul.f32 %v2283_v58, %v2270_v51  ;;  %v2474_v8 = vmul.f32 %v2277_v55, %v2320_v21  ;;  %v2478_v16 = vmul.f32 %v2279_v56, %v2320_v21 }
  0xc4   : > { %v782_v48 = vpack.c.bf16 %v758_v27, %v754_v33  ;;  %v784_v52 = vpack.c.bf16 %v760_v37, %v756_v32  ;;  %v781_v7 = vpack.c.bf16 %v757_v38, %v753_v30  ;;  %v783_v35 = vpack.c.bf16 %v759_v39, %v755_v15 }
  0xc5   : > { %v2482_v17 = vmul.f32 %v2281_v57, %v2320_v21  ;;  %v2486_v24 = vmul.f32 %v2283_v58, %v2320_v21  ;;  %v467_v44 = vadd.f32 %v2290_v1, %v395_v60  ;;  %v468_v51 = vadd.f32 %v2290_v1, %v396_v42  ;;  %v507_v21 = vpop.permute.xlu0 %506 }
  0xc6   : > { %884 = vmatprep.subr.bf16.mxu0 %v782_v48  ;;  %957 = vmatprep.subr.bf16.mxu1 %v784_v52  ;;  %v567_v53 = vmul.f32 %v2318_v20, %v499_v12  ;;  %v568_v29 = vmul.f32 %v2307_v14, %v499_v12  ;;  %v597_v61 = vadd.f32 %v565_v10, %v465_v43 }
  0xc7   : > { %v503_v11 = vpop.permute.xlu1 %502  ;;  %885 = vmatpush1.bf16.msra.mxu0 %v781_v7  ;;  %958 = vmatpush1.bf16.msra.mxu1 %v783_v35  ;;  %v598_v59 = vadd.f32 %v566_v41, %v466_v50  ;;  %v469_v4 = vadd.f32 %v437_v6, %v397_v40  ;;  %v470_v62 = vadd.f32 %v437_v6, %v398_v18 }
  0xc8   : > { %v569_v34 = vmul.f32 %v2316_v19, %v503_v11  ;;  %v570_v54 = vmul.f32 %v2305_v13, %v503_v11  ;;  %v571_v0 = vmul.f32 %v2318_v20, %v503_v11  ;;  %v572_v3 = vmul.f32 %v2307_v14, %v503_v11 }
  0xc9   : > { %v471_v5 = vadd.f32 %v437_v6, %v399_v46  ;;  %v472_v49 = vadd.f32 %v437_v6, %v400_v63  ;;  %v599_v15 = vadd.f32 %v567_v53, %v467_v44  ;;  %v600_v27 = vadd.f32 %v568_v29, %v468_v51  ;;  %v643_v51 = vpop.permute.xlu0 %642 }
  0xca   : > { %v2501_v37 = vmul.f32 %v2316_v19, %v507_v21  ;;  %v2504_v38 = vmul.f32 %v2305_v13, %v507_v21  ;;  %v601_v39 = vadd.f32 %v569_v34, %v469_v4  ;;  %v602_v48 = vadd.f32 %v570_v54, %v470_v62 }
  0xcb   : > { %v603_v6 = vadd.f32 %v571_v0, %v471_v5  ;;  %v604_v52 = vadd.f32 %v572_v3, %v472_v49 }
  0xcc   : > { %v332_v22 = vpop.permute.xlu1 %331 }
  0xcd   : > { %v401_v50 = vmul.f32 %v2277_v55, %v332_v22  ;;  %v402_v10 = vmul.f32 %v2279_v56, %v332_v22  ;;  %v403_v41 = vmul.f32 %v2281_v57, %v332_v22  ;;  %v404_v40 = vmul.f32 %v2283_v58, %v332_v22 }
  0xce   : > { %v575_v56 = vmul.f32 %v2318_v20, %v507_v21  ;;  %v576_v57 = vmul.f32 %v2307_v14, %v507_v21  ;;  %v709_v58 = vmul.f32 %v2324_v23, %v643_v51  ;;  %v710_v22 = vmul.f32 %v2328_v26, %v643_v51 }
  0xcf   : > { %v476_v21 = vadd.f32 %v2363_v47, %v404_v40 }
  0xd1   : > { %v631_v1 = vpop.permute.xlu1 %630 }
  0xd2   : > { %v697_v9 = vmul.f32 %v2324_v23, %v631_v1  ;;  %v698_v33 = vmul.f32 %v2328_v26, %v631_v1  ;;  %v699_v32 = vmul.f32 %v2326_v25, %v631_v1  ;;  %v700_v30 = vmul.f32 %v2342_v28, %v631_v1 }
  0xd3   : > { %v473_v1 = vadd.f32 %v2363_v47, %v401_v50 }
  0xd4   : > { %v730_v35 = vadd.f32 %v698_v33, %v598_v59  ;;  %v732_v45 = vadd.f32 %v700_v30, %v600_v27  ;;  %v729_v36 = vadd.f32 %v697_v9, %v597_v61  ;;  %v731_v11 = vadd.f32 %v699_v32, %v599_v15 }
  0xd5   : > { %v635_v7 = vpop.permute.xlu1 %634  ;;  %v474_v9 = vadd.f32 %v2363_v47, %v402_v10  ;;  %v711_v33 = vmul.f32 %v2326_v25, %v643_v51  ;;  %v712_v32 = vmul.f32 %v2342_v28, %v643_v51  ;;  %v475_v30 = vadd.f32 %v2363_v47, %v403_v41 }
  0xd6   : > { %v701_v12 = vmul.f32 %v2324_v23, %v635_v7  ;;  %v702_v60 = vmul.f32 %v2328_v26, %v635_v7  ;;  %v703_v42 = vmul.f32 %v2326_v25, %v635_v7  ;;  %v704_v43 = vmul.f32 %v2342_v28, %v635_v7 }
  0xd7   : > { %v762_v53 = vmax.f32 %v730_v35, 0.0  ;;  %v764_v29 = vmax.f32 %v732_v45, 0.0  ;;  %v761_v61 = vmax.f32 %v729_v36, 0.0  ;;  %v763_v59 = vmax.f32 %v731_v11, 0.0 }
  0xd8   : > { %v734_v18 = vadd.f32 %v702_v60, %v602_v48  ;;  %v736_v46 = vadd.f32 %v704_v43, %v604_v52  ;;  %v733_v63 = vadd.f32 %v701_v12, %v601_v39  ;;  %v735_v44 = vadd.f32 %v703_v42, %v603_v6 }
  0xd9   : > { %v608_v12 = vadd.f32 %v576_v57, %v476_v21 }
  0xda   : > { %v447_v34 = vpop.permute.xlu1 %446  ;;  %v766_v54 = vmax.f32 %v734_v18, 0.0  ;;  %v768_v0 = vmax.f32 %v736_v46, 0.0  ;;  %v765_v3 = vmax.f32 %v733_v63, 0.0  ;;  %v767_v55 = vmax.f32 %v735_v44, 0.0 }
  0xdb   : > { %v477_v15 = vadd.f32 %v447_v34, %v2474_v8  ;;  %v478_v27 = vadd.f32 %v447_v34, %v2478_v16  ;;  %v479_v39 = vadd.f32 %v447_v34, %v2482_v17  ;;  %v480_v48 = vadd.f32 %v447_v34, %v2486_v24 }
  0xdc   : > { %v786_v4 = vpack.c.bf16 %v766_v54, %v762_v53  ;;  %v788_v62 = vpack.c.bf16 %v768_v0, %v764_v29  ;;  %v785_v5 = vpack.c.bf16 %v765_v3, %v761_v61  ;;  %v787_v49 = vpack.c.bf16 %v767_v55, %v763_v59  ;;  %v1981_v54 = vld [vmem:[%s2678_s3 + $0x10] sm:$0xff]   ;;  %v1982_v0 = vld [vmem:[%s2678_s3 + $0x18] sm:$0xff]  }
  0xdd   : > { %v605_v16 = vadd.f32 %v2501_v37, %v473_v1  ;;  %v606_v17 = vadd.f32 %v2504_v38, %v474_v9  ;;  %v607_v24 = vadd.f32 %v575_v56, %v475_v30 }
  0xde   : > { %886 = vmatprep.subr.bf16.mxu0 %v786_v4  ;;  %959 = vmatprep.subr.bf16.mxu1 %v788_v62 }
  0xdf   : > { %v511_v6 = vpop.permute.xlu1 %510  ;;  %887 = vmatpush1.bf16.msra.mxu0 %v785_v5  ;;  %960 = vmatpush1.bf16.msra.mxu1 %v787_v49 }
  0xe0   : > { %v577_v52 = vmul.f32 %v2316_v19, %v511_v6  ;;  %v578_v7 = vmul.f32 %v2305_v13, %v511_v6  ;;  %v579_v35 = vmul.f32 %v2318_v20, %v511_v6  ;;  %v580_v47 = vmul.f32 %v2307_v14, %v511_v6 }
  0xe2   : > { %v609_v8 = vadd.f32 %v577_v52, %v477_v15  ;;  %v610_v45 = vadd.f32 %v578_v7, %v478_v27  ;;  %v611_v36 = vadd.f32 %v579_v35, %v479_v39  ;;  %v612_v11 = vadd.f32 %v580_v47, %v480_v48 }
  0xe4   : > { %v639_v60 = vpop.permute.xlu1 %638  ;;  %v742_v42 = vadd.f32 %v710_v22, %v610_v45  ;;  %v744_v43 = vadd.f32 %v712_v32, %v612_v11  ;;  %v741_v19 = vadd.f32 %v709_v58, %v609_v8  ;;  %v743_v50 = vadd.f32 %v711_v33, %v611_v36  ;;  %v822_v36 = vpop.permute.xlu0 %821 }
  0xe5   : > { %v705_v13 = vmul.f32 %v2324_v23, %v639_v60  ;;  %v706_v20 = vmul.f32 %v2328_v26, %v639_v60  ;;  %v707_v14 = vmul.f32 %v2326_v25, %v639_v60  ;;  %v708_v10 = vmul.f32 %v2342_v28, %v639_v60  ;;  %v1979_v25 = vld [vmem:[%s2678_s3] sm:$0xff]   ;;  %v1980_v28 = vld [vmem:[%s2678_s3 + $0x8] sm:$0xff]  }
  0xe6   : > { %v774_v38 = vmax.f32 %v742_v42, 0.0  ;;  %v776_v46 = vmax.f32 %v744_v43, 0.0  ;;  %v773_v63 = vmax.f32 %v741_v19, 0.0  ;;  %v775_v44 = vmax.f32 %v743_v50, 0.0 }
  0xe7   : > { %v738_v41 = vadd.f32 %v706_v20, %v606_v17  ;;  %v740_v40 = vadd.f32 %v708_v10, %v608_v12  ;;  %v737_v37 = vadd.f32 %v705_v13, %v605_v16  ;;  %v739_v18 = vadd.f32 %v707_v14, %v607_v24 }
  0xe9   : > { %v770_v51 = vmax.f32 %v738_v41, 0.0  ;;  %v772_v53 = vmax.f32 %v740_v40, 0.0  ;;  %v769_v29 = vmax.f32 %v737_v37, 0.0  ;;  %v771_v61 = vmax.f32 %v739_v18, 0.0  ;;  %v812_v3 = vpop.permute.xlu1 %811 }
  0xeb   : > { %v790_v59 = vpack.c.bf16 %v774_v38, %v770_v51  ;;  %v792_v23 = vpack.c.bf16 %v776_v46, %v772_v53  ;;  %v789_v34 = vpack.c.bf16 %v773_v63, %v769_v29  ;;  %v791_v26 = vpack.c.bf16 %v775_v44, %v771_v61 }
  0xed   : > { %888 = vmatprep.subr.bf16.mxu0 %v790_v59  ;;  %961 = vmatprep.subr.bf16.mxu1 %v792_v23  ;;  %v817_v55 = vpop.permute.xlu1 %816 }
  0xee   : > { %889 = vmatpush1.bf16.msra.mxu0 %v789_v34  ;;  %962 = vmatpush1.bf16.msra.mxu1 %v791_v26  ;;  %v837_v26 = vpop.permute.xlu0 %836 }
  0xf1   : > { %1844 = vmatmul.mubr.msk.bf16.vlgmr.msra.gmra.mrb[0].mxu0 %vm869_vm0, %v1979_v25  ;;  %1848 = vmatmul.mubr.msk.bf16.vlgmr.msra.gmra.mrb[0].mxu1 %vm869_vm0, %v1979_v25  ;;  %v827_v45 = vpop.permute.xlu1 %826 }
  0xf2   : > { %924 = vmatprep.mubr.bf16.mxu0 %v2055_v2  ;;  %997 = vmatprep.mubr.bf16.mxu1 %v2055_v2 }
  0xf5   : > { %v832_v34 = vpop.permute.xlu1 %831 }
  0xf9   : > { %1845 = vmatmul.mubr.msk.bf16.gmra.mrb[4].mxu0 %vm869_vm0, %v1980_v28  ;;  %1849 = vmatmul.mubr.msk.bf16.gmra.mrb[4].mxu1 %vm869_vm0, %v1980_v28 }
  0xfa   : > { %934 = vmatprep.mubr.bf16.mxu0 %v2055_v2  ;;  %1007 = vmatprep.mubr.bf16.mxu1 %v2055_v2 }
 0x101   : > { %1846 = vmatmul.mubr.msk.bf16.gmra.mrb[8].mxu0 %vm869_vm0, %v1981_v54  ;;  %1850 = vmatmul.mubr.msk.bf16.gmra.mrb[8].mxu1 %vm869_vm0, %v1981_v54 }
 0x102   : > { %944 = vmatprep.mubr.bf16.mxu0 %v2055_v2  ;;  %1017 = vmatprep.mubr.bf16.mxu1 %v2055_v2 }
 0x109   : > { %1847 = vmatmul.mubr.msk.bf16.gmra.mrb[12].mxu0 %vm869_vm0, %v1982_v0  ;;  %1851 = vmatmul.mubr.msk.bf16.gmra.mrb[12].mxu1 %vm869_vm0, %v1982_v0 }
 0x10a   : > { %1198 = vmatprep.mubr.bf16.mxu0 %v2055_v2  ;;  %1271 = vmatprep.mubr.bf16.mxu1 %v2055_v2 }
 0x1c4   : > { %v916_v56 = vpop.f32.mrb[0].mxu0  ;;  %v989_v57 = vpop.f32.mrb[0].mxu1 }
 0x1c5   : > { %v917_v58 = vadd.f32 %v916_v56, %v812_v3  ;;  %v990_v22 = vadd.f32 %v989_v57, %v812_v3  ;;  %v918_v4 = vpop.f32.mrb[1].mxu0  ;;  %v991_v62 = vpop.f32.mrb[1].mxu1 }
 0x1c6   : > { %v919_v5 = vadd.f32 %v918_v4, %v812_v3  ;;  %v992_v49 = vadd.f32 %v991_v62, %v812_v3  ;;  %v920_v1 = vpop.f32.mrb[2].mxu0  ;;  %v993_v9 = vpop.f32.mrb[2].mxu1 }
 0x1c7   : > { %v921_v33 = vadd.f32 %v920_v1, %v817_v55  ;;  %v994_v32 = vadd.f32 %v993_v9, %v817_v55  ;;  %v922_v30 = vpop.f32.mrb[3].mxu0  ;;  %v995_v21 = vpop.f32.mrb[3].mxu1  ;;  %v1028_v39 = vmax.f32 %v917_v58, 0.0  ;;  %v1030_v48 = vmax.f32 %v990_v22, 0.0 }
 0x1c8   : > { %v923_v15 = vadd.f32 %v922_v30, %v817_v55  ;;  %v996_v27 = vadd.f32 %v995_v21, %v817_v55  ;;  %v1029_v7 = vmax.f32 %v919_v5, 0.0  ;;  %v1031_v35 = vmax.f32 %v992_v49, 0.0 }
 0x1c9   : > { %v1032_v6 = vmax.f32 %v921_v33, 0.0  ;;  %v1034_v52 = vmax.f32 %v994_v32, 0.0 }
 0x1ca   : > { %v1033_v47 = vmax.f32 %v923_v15, 0.0  ;;  %v1035_v8 = vmax.f32 %v996_v27, 0.0 }
 0x1cb   : > { %v1060_v11 = vpack.c.bf16 %v1032_v6, %v1028_v39  ;;  %v1062_v16 = vpack.c.bf16 %v1034_v52, %v1030_v48 }
 0x1cc   : > { %v1061_v17 = vpack.c.bf16 %v1033_v47, %v1029_v7  ;;  %v1063_v24 = vpack.c.bf16 %v1035_v8, %v1031_v35  ;;  %v926_v12 = vpop.f32.mrb[4].mxu0  ;;  %v999_v60 = vpop.f32.mrb[4].mxu1 }
 0x1cd   : > { %v927_v42 = vadd.f32 %v926_v12, %v822_v36  ;;  %v1000_v43 = vadd.f32 %v999_v60, %v822_v36  ;;  %v928_v19 = vpop.f32.mrb[5].mxu0  ;;  %v1001_v50 = vpop.f32.mrb[5].mxu1 }
 0x1ce   : > { %v929_v13 = vadd.f32 %v928_v19, %v822_v36  ;;  %v1002_v20 = vadd.f32 %v1001_v50, %v822_v36  ;;  %v930_v14 = vpop.f32.mrb[6].mxu0  ;;  %v1003_v10 = vpop.f32.mrb[6].mxu1  ;;  %1166 = vmatprep.subr.bf16.mxu0 %v1061_v17  ;;  %1239 = vmatprep.subr.bf16.mxu1 %v1063_v24 }
 0x1cf   : > { %v931_v41 = vadd.f32 %v930_v14, %v827_v45  ;;  %v1004_v40 = vadd.f32 %v1003_v10, %v827_v45  ;;  %v932_v37 = vpop.f32.mrb[7].mxu0  ;;  %v1005_v18 = vpop.f32.mrb[7].mxu1  ;;  %1167 = vmatpush1.bf16.msra.mxu0 %v1060_v11  ;;  %1240 = vmatpush1.bf16.msra.mxu1 %v1062_v16  ;;  %v1036_v63 = vmax.f32 %v927_v42, 0.0  ;;  %v1038_v44 = vmax.f32 %v1000_v43, 0.0 }
 0x1d0   : > { %v933_v38 = vadd.f32 %v932_v37, %v827_v45  ;;  %v1006_v46 = vadd.f32 %v1005_v18, %v827_v45  ;;  %v1037_v29 = vmax.f32 %v929_v13, 0.0  ;;  %v1039_v61 = vmax.f32 %v1002_v20, 0.0  ;;  %v842_v47 = vpop.permute.xlu1 %841  ;;  %v847_v8 = vpop.permute.xlu0 %846 }
 0x1d1   : > { %v1040_v51 = vmax.f32 %v931_v41, 0.0  ;;  %v1042_v53 = vmax.f32 %v1004_v40, 0.0 }
 0x1d2   : > { %v1041_v59 = vmax.f32 %v933_v38, 0.0  ;;  %v1043_v23 = vmax.f32 %v1006_v46, 0.0 }
 0x1d3   : > { %v1064_v25 = vpack.c.bf16 %v1040_v51, %v1036_v63  ;;  %v1066_v28 = vpack.c.bf16 %v1042_v53, %v1038_v44 }
 0x1d4   : > { %v1065_v54 = vpack.c.bf16 %v1041_v59, %v1037_v29  ;;  %v1067_v0 = vpack.c.bf16 %v1043_v23, %v1039_v61  ;;  %v936_v3 = vpop.f32.mrb[8].mxu0  ;;  %v1009_v55 = vpop.f32.mrb[8].mxu1 }
 0x1d5   : > { %v937_v56 = vadd.f32 %v936_v3, %v832_v34  ;;  %v1010_v57 = vadd.f32 %v1009_v55, %v832_v34  ;;  %v938_v58 = vpop.f32.mrb[9].mxu0  ;;  %v1011_v22 = vpop.f32.mrb[9].mxu1 }
 0x1d6   : > { %v939_v4 = vadd.f32 %v938_v58, %v832_v34  ;;  %v1012_v62 = vadd.f32 %v1011_v22, %v832_v34  ;;  %v940_v5 = vpop.f32.mrb[10].mxu0  ;;  %v1013_v49 = vpop.f32.mrb[10].mxu1  ;;  %1168 = vmatprep.subr.bf16.mxu0 %v1065_v54  ;;  %1241 = vmatprep.subr.bf16.mxu1 %v1067_v0  ;;  %v1985_v54 = vld [vmem:[%s2678_s3 + $0x30] sm:$0xff]   ;;  %v1986_v0 = vld [vmem:[%s2678_s3 + $0x38] sm:$0xff]  }
 0x1d7   : > { %v941_v1 = vadd.f32 %v940_v5, %v837_v26  ;;  %v1014_v9 = vadd.f32 %v1013_v49, %v837_v26  ;;  %v942_v33 = vpop.f32.mrb[11].mxu0  ;;  %v1015_v32 = vpop.f32.mrb[11].mxu1  ;;  %1169 = vmatpush1.bf16.msra.mxu0 %v1064_v25  ;;  %1242 = vmatpush1.bf16.msra.mxu1 %v1066_v28  ;;  %v1044_v15 = vmax.f32 %v937_v56, 0.0  ;;  %v1046_v27 = vmax.f32 %v1010_v57, 0.0  ;;  %v1983_v25 = vld [vmem:[%s2678_s3 + $0x20] sm:$0xff]   ;;  %v1984_v28 = vld [vmem:[%s2678_s3 + $0x28] sm:$0xff]  }
 0x1d8   : > { %v943_v30 = vadd.f32 %v942_v33, %v837_v26  ;;  %v1016_v21 = vadd.f32 %v1015_v32, %v837_v26  ;;  %v1045_v6 = vmax.f32 %v939_v4, 0.0  ;;  %v1047_v52 = vmax.f32 %v1012_v62, 0.0  ;;  %v1097_v3 = vpop.permute.xlu1 %1096  ;;  %v1102_v55 = vpop.permute.xlu0 %1101 }
 0x1d9   : > { %v1048_v39 = vmax.f32 %v941_v1, 0.0  ;;  %v1050_v48 = vmax.f32 %v1014_v9, 0.0 }
 0x1da   : > { %v1049_v7 = vmax.f32 %v943_v30, 0.0  ;;  %v1051_v35 = vmax.f32 %v1016_v21, 0.0 }
 0x1db   : > { %v1068_v45 = vpack.c.bf16 %v1048_v39, %v1044_v15  ;;  %v1070_v36 = vpack.c.bf16 %v1050_v48, %v1046_v27 }
 0x1dc   : > { %v1069_v11 = vpack.c.bf16 %v1049_v7, %v1045_v6  ;;  %v1071_v16 = vpack.c.bf16 %v1051_v35, %v1047_v52  ;;  %v946_v17 = vpop.f32.mrb[12].mxu0  ;;  %v1019_v24 = vpop.f32.mrb[12].mxu1 }
 0x1dd   : > { %v947_v12 = vadd.f32 %v946_v17, %v842_v47  ;;  %v1020_v60 = vadd.f32 %v1019_v24, %v842_v47  ;;  %v948_v42 = vpop.f32.mrb[13].mxu0  ;;  %v1021_v43 = vpop.f32.mrb[13].mxu1 }
 0x1de   : > { %v949_v19 = vadd.f32 %v948_v42, %v842_v47  ;;  %v1022_v50 = vadd.f32 %v1021_v43, %v842_v47  ;;  %v950_v13 = vpop.f32.mrb[14].mxu0  ;;  %v1023_v20 = vpop.f32.mrb[14].mxu1  ;;  %1170 = vmatprep.subr.bf16.mxu0 %v1069_v11  ;;  %1243 = vmatprep.subr.bf16.mxu1 %v1071_v16 }
 0x1df   : > { %v951_v14 = vadd.f32 %v950_v13, %v847_v8  ;;  %v1024_v10 = vadd.f32 %v1023_v20, %v847_v8  ;;  %v952_v41 = vpop.f32.mrb[15].mxu0  ;;  %v1025_v40 = vpop.f32.mrb[15].mxu1  ;;  %1171 = vmatpush1.bf16.msra.mxu0 %v1068_v45  ;;  %1244 = vmatpush1.bf16.msra.mxu1 %v1070_v36  ;;  %v1052_v38 = vmax.f32 %v947_v12, 0.0  ;;  %v1054_v46 = vmax.f32 %v1020_v60, 0.0 }
 0x1e0   : > { %v953_v37 = vadd.f32 %v952_v41, %v847_v8  ;;  %v1026_v18 = vadd.f32 %v1025_v40, %v847_v8  ;;  %v1053_v51 = vmax.f32 %v949_v19, 0.0  ;;  %v1055_v53 = vmax.f32 %v1022_v50, 0.0  ;;  %v1107_v45 = vpop.permute.xlu1 %1106  ;;  %v1112_v36 = vpop.permute.xlu0 %1111 }
 0x1e1   : > { %v1056_v63 = vmax.f32 %v951_v14, 0.0  ;;  %v1058_v44 = vmax.f32 %v1024_v10, 0.0 }
 0x1e2   : > { %v1057_v29 = vmax.f32 %v953_v37, 0.0  ;;  %v1059_v61 = vmax.f32 %v1026_v18, 0.0 }
 0x1e3   : > { %v1072_v59 = vpack.c.bf16 %v1056_v63, %v1052_v38  ;;  %v1074_v23 = vpack.c.bf16 %v1058_v44, %v1054_v46 }
 0x1e4   : > { %v1073_v34 = vpack.c.bf16 %v1057_v29, %v1053_v51  ;;  %v1075_v26 = vpack.c.bf16 %v1059_v61, %v1055_v53 }
 0x1e6   : > { %1172 = vmatprep.subr.bf16.mxu0 %v1073_v34  ;;  %1245 = vmatprep.subr.bf16.mxu1 %v1075_v26  ;;  %v1117_v34 = vpop.permute.xlu1 %1116  ;;  %v1122_v26 = vpop.permute.xlu0 %1121 }
 0x1e7   : > { %1173 = vmatpush1.bf16.msra.mxu0 %v1072_v59  ;;  %1246 = vmatpush1.bf16.msra.mxu1 %v1074_v23 }
 0x1ea   : > { %1872 = vmatmul.mubr.msk.bf16.vlgmr.msra.gmra.mrb[16].mxu0 %vm869_vm0, %v1983_v25  ;;  %1876 = vmatmul.mubr.msk.bf16.vlgmr.msra.gmra.mrb[16].mxu1 %vm869_vm0, %v1983_v25 }
 0x1eb   : > { %1208 = vmatprep.mubr.bf16.mxu0 %v2055_v2  ;;  %1281 = vmatprep.mubr.bf16.mxu1 %v2055_v2 }
 0x1f2   : > { %1873 = vmatmul.mubr.msk.bf16.gmra.mrb[20].mxu0 %vm869_vm0, %v1984_v28  ;;  %1877 = vmatmul.mubr.msk.bf16.gmra.mrb[20].mxu1 %vm869_vm0, %v1984_v28 }
 0x1f3   : > { %1218 = vmatprep.mubr.bf16.mxu0 %v2055_v2  ;;  %1291 = vmatprep.mubr.bf16.mxu1 %v2055_v2 }
 0x1fa   : > { %1874 = vmatmul.mubr.msk.bf16.gmra.mrb[24].mxu0 %vm869_vm0, %v1985_v54  ;;  %1878 = vmatmul.mubr.msk.bf16.gmra.mrb[24].mxu1 %vm869_vm0, %v1985_v54 }
 0x1fb   : > { %1228 = vmatprep.mubr.bf16.mxu0 %v2055_v2  ;;  %1301 = vmatprep.mubr.bf16.mxu1 %v2055_v2 }
 0x202   : > { %1875 = vmatmul.mubr.msk.bf16.gmra.mrb[28].mxu0 %vm869_vm0, %v1986_v0  ;;  %1879 = vmatmul.mubr.msk.bf16.gmra.mrb[28].mxu1 %vm869_vm0, %v1986_v0 }
 0x203   : > { %1482 = vmatprep.mubr.bf16.mxu0 %v2055_v2  ;;  %1555 = vmatprep.mubr.bf16.mxu1 %v2055_v2 }
 0x2bd   : > { %v1200_v56 = vpop.f32.mrb[16].mxu0  ;;  %v1273_v57 = vpop.f32.mrb[16].mxu1 }
 0x2be   : > { %v1201_v58 = vadd.f32 %v1200_v56, %v1097_v3  ;;  %v1274_v22 = vadd.f32 %v1273_v57, %v1097_v3  ;;  %v1202_v4 = vpop.f32.mrb[17].mxu0  ;;  %v1275_v62 = vpop.f32.mrb[17].mxu1 }
 0x2bf   : > { %v1203_v5 = vadd.f32 %v1202_v4, %v1097_v3  ;;  %v1276_v49 = vadd.f32 %v1275_v62, %v1097_v3  ;;  %v1204_v1 = vpop.f32.mrb[18].mxu0  ;;  %v1277_v9 = vpop.f32.mrb[18].mxu1 }
 0x2c0   : > { %v1205_v33 = vadd.f32 %v1204_v1, %v1102_v55  ;;  %v1278_v32 = vadd.f32 %v1277_v9, %v1102_v55  ;;  %v1206_v30 = vpop.f32.mrb[19].mxu0  ;;  %v1279_v21 = vpop.f32.mrb[19].mxu1  ;;  %v1312_v39 = vmax.f32 %v1201_v58, 0.0  ;;  %v1314_v48 = vmax.f32 %v1274_v22, 0.0 }
 0x2c1   : > { %v1207_v15 = vadd.f32 %v1206_v30, %v1102_v55  ;;  %v1280_v27 = vadd.f32 %v1279_v21, %v1102_v55  ;;  %v1313_v7 = vmax.f32 %v1203_v5, 0.0  ;;  %v1315_v35 = vmax.f32 %v1276_v49, 0.0 }
 0x2c2   : > { %v1316_v6 = vmax.f32 %v1205_v33, 0.0  ;;  %v1318_v52 = vmax.f32 %v1278_v32, 0.0 }
 0x2c3   : > { %v1317_v47 = vmax.f32 %v1207_v15, 0.0  ;;  %v1319_v8 = vmax.f32 %v1280_v27, 0.0 }
 0x2c4   : > { %v1344_v11 = vpack.c.bf16 %v1316_v6, %v1312_v39  ;;  %v1346_v16 = vpack.c.bf16 %v1318_v52, %v1314_v48 }
 0x2c5   : > { %v1345_v17 = vpack.c.bf16 %v1317_v47, %v1313_v7  ;;  %v1347_v24 = vpack.c.bf16 %v1319_v8, %v1315_v35  ;;  %v1210_v12 = vpop.f32.mrb[20].mxu0  ;;  %v1283_v60 = vpop.f32.mrb[20].mxu1 }
 0x2c6   : > { %v1211_v42 = vadd.f32 %v1210_v12, %v1107_v45  ;;  %v1284_v43 = vadd.f32 %v1283_v60, %v1107_v45  ;;  %v1212_v19 = vpop.f32.mrb[21].mxu0  ;;  %v1285_v50 = vpop.f32.mrb[21].mxu1 }
 0x2c7   : > { %v1213_v13 = vadd.f32 %v1212_v19, %v1107_v45  ;;  %v1286_v20 = vadd.f32 %v1285_v50, %v1107_v45  ;;  %v1214_v14 = vpop.f32.mrb[22].mxu0  ;;  %v1287_v10 = vpop.f32.mrb[22].mxu1  ;;  %1450 = vmatprep.subr.bf16.mxu0 %v1345_v17  ;;  %1523 = vmatprep.subr.bf16.mxu1 %v1347_v24 }
 0x2c8   : > { %v1215_v41 = vadd.f32 %v1214_v14, %v1112_v36  ;;  %v1288_v40 = vadd.f32 %v1287_v10, %v1112_v36  ;;  %v1216_v37 = vpop.f32.mrb[23].mxu0  ;;  %v1289_v18 = vpop.f32.mrb[23].mxu1  ;;  %1451 = vmatpush1.bf16.msra.mxu0 %v1344_v11  ;;  %1524 = vmatpush1.bf16.msra.mxu1 %v1346_v16  ;;  %v1320_v63 = vmax.f32 %v1211_v42, 0.0  ;;  %v1322_v44 = vmax.f32 %v1284_v43, 0.0 }
 0x2c9   : > { %v1217_v38 = vadd.f32 %v1216_v37, %v1112_v36  ;;  %v1290_v46 = vadd.f32 %v1289_v18, %v1112_v36  ;;  %v1321_v29 = vmax.f32 %v1213_v13, 0.0  ;;  %v1323_v61 = vmax.f32 %v1286_v20, 0.0  ;;  %v1127_v47 = vpop.permute.xlu1 %1126  ;;  %v1132_v8 = vpop.permute.xlu0 %1131 }
 0x2ca   : > { %v1324_v51 = vmax.f32 %v1215_v41, 0.0  ;;  %v1326_v53 = vmax.f32 %v1288_v40, 0.0 }
 0x2cb   : > { %v1325_v59 = vmax.f32 %v1217_v38, 0.0  ;;  %v1327_v23 = vmax.f32 %v1290_v46, 0.0 }
 0x2cc   : > { %v1348_v25 = vpack.c.bf16 %v1324_v51, %v1320_v63  ;;  %v1350_v28 = vpack.c.bf16 %v1326_v53, %v1322_v44 }
 0x2cd   : > { %v1349_v54 = vpack.c.bf16 %v1325_v59, %v1321_v29  ;;  %v1351_v0 = vpack.c.bf16 %v1327_v23, %v1323_v61  ;;  %v1220_v3 = vpop.f32.mrb[24].mxu0  ;;  %v1293_v55 = vpop.f32.mrb[24].mxu1 }
 0x2ce   : > { %v1221_v56 = vadd.f32 %v1220_v3, %v1117_v34  ;;  %v1294_v57 = vadd.f32 %v1293_v55, %v1117_v34  ;;  %v1222_v58 = vpop.f32.mrb[25].mxu0  ;;  %v1295_v22 = vpop.f32.mrb[25].mxu1 }
 0x2cf   : > { %v1223_v4 = vadd.f32 %v1222_v58, %v1117_v34  ;;  %v1296_v62 = vadd.f32 %v1295_v22, %v1117_v34  ;;  %v1224_v5 = vpop.f32.mrb[26].mxu0  ;;  %v1297_v49 = vpop.f32.mrb[26].mxu1  ;;  %1452 = vmatprep.subr.bf16.mxu0 %v1349_v54  ;;  %1525 = vmatprep.subr.bf16.mxu1 %v1351_v0  ;;  %v1989_v54 = vld [vmem:[%s2678_s3 + $0x50] sm:$0xff]   ;;  %v1990_v0 = vld [vmem:[%s2678_s3 + $0x58] sm:$0xff]  }
 0x2d0   : > { %v1225_v1 = vadd.f32 %v1224_v5, %v1122_v26  ;;  %v1298_v9 = vadd.f32 %v1297_v49, %v1122_v26  ;;  %v1226_v33 = vpop.f32.mrb[27].mxu0  ;;  %v1299_v32 = vpop.f32.mrb[27].mxu1  ;;  %1453 = vmatpush1.bf16.msra.mxu0 %v1348_v25  ;;  %1526 = vmatpush1.bf16.msra.mxu1 %v1350_v28  ;;  %v1328_v15 = vmax.f32 %v1221_v56, 0.0  ;;  %v1330_v27 = vmax.f32 %v1294_v57, 0.0  ;;  %v1987_v25 = vld [vmem:[%s2678_s3 + $0x40] sm:$0xff]   ;;  %v1988_v28 = vld [vmem:[%s2678_s3 + $0x48] sm:$0xff]  }
 0x2d1   : > { %v1227_v30 = vadd.f32 %v1226_v33, %v1122_v26  ;;  %v1300_v21 = vadd.f32 %v1299_v32, %v1122_v26  ;;  %v1329_v6 = vmax.f32 %v1223_v4, 0.0  ;;  %v1331_v52 = vmax.f32 %v1296_v62, 0.0  ;;  %v1381_v3 = vpop.permute.xlu1 %1380  ;;  %v1386_v55 = vpop.permute.xlu0 %1385 }
 0x2d2   : > { %v1332_v39 = vmax.f32 %v1225_v1, 0.0  ;;  %v1334_v48 = vmax.f32 %v1298_v9, 0.0 }
 0x2d3   : > { %v1333_v7 = vmax.f32 %v1227_v30, 0.0  ;;  %v1335_v35 = vmax.f32 %v1300_v21, 0.0 }
 0x2d4   : > { %v1352_v45 = vpack.c.bf16 %v1332_v39, %v1328_v15  ;;  %v1354_v36 = vpack.c.bf16 %v1334_v48, %v1330_v27 }
 0x2d5   : > { %v1353_v11 = vpack.c.bf16 %v1333_v7, %v1329_v6  ;;  %v1355_v16 = vpack.c.bf16 %v1335_v35, %v1331_v52  ;;  %v1230_v17 = vpop.f32.mrb[28].mxu0  ;;  %v1303_v24 = vpop.f32.mrb[28].mxu1 }
 0x2d6   : > { %v1231_v12 = vadd.f32 %v1230_v17, %v1127_v47  ;;  %v1304_v60 = vadd.f32 %v1303_v24, %v1127_v47  ;;  %v1232_v42 = vpop.f32.mrb[29].mxu0  ;;  %v1305_v43 = vpop.f32.mrb[29].mxu1 }
 0x2d7   : > { %v1233_v19 = vadd.f32 %v1232_v42, %v1127_v47  ;;  %v1306_v50 = vadd.f32 %v1305_v43, %v1127_v47  ;;  %v1234_v13 = vpop.f32.mrb[30].mxu0  ;;  %v1307_v20 = vpop.f32.mrb[30].mxu1  ;;  %1454 = vmatprep.subr.bf16.mxu0 %v1353_v11  ;;  %1527 = vmatprep.subr.bf16.mxu1 %v1355_v16 }
 0x2d8   : > { %v1235_v14 = vadd.f32 %v1234_v13, %v1132_v8  ;;  %v1308_v10 = vadd.f32 %v1307_v20, %v1132_v8  ;;  %v1236_v41 = vpop.f32.mrb[31].mxu0  ;;  %v1309_v40 = vpop.f32.mrb[31].mxu1  ;;  %1455 = vmatpush1.bf16.msra.mxu0 %v1352_v45  ;;  %1528 = vmatpush1.bf16.msra.mxu1 %v1354_v36  ;;  %v1336_v38 = vmax.f32 %v1231_v12, 0.0  ;;  %v1338_v46 = vmax.f32 %v1304_v60, 0.0 }
 0x2d9   : > { %v1237_v37 = vadd.f32 %v1236_v41, %v1132_v8  ;;  %v1310_v18 = vadd.f32 %v1309_v40, %v1132_v8  ;;  %v1337_v51 = vmax.f32 %v1233_v19, 0.0  ;;  %v1339_v53 = vmax.f32 %v1306_v50, 0.0  ;;  %v1391_v8 = vpop.permute.xlu1 %1390  ;;  %v1396_v45 = vpop.permute.xlu0 %1395 }
 0x2da   : > { %v1340_v63 = vmax.f32 %v1235_v14, 0.0  ;;  %v1342_v44 = vmax.f32 %v1308_v10, 0.0 }
 0x2db   : > { %v1341_v29 = vmax.f32 %v1237_v37, 0.0  ;;  %v1343_v61 = vmax.f32 %v1310_v18, 0.0 }
 0x2dc   : > { %v1356_v59 = vpack.c.bf16 %v1340_v63, %v1336_v38  ;;  %v1358_v23 = vpack.c.bf16 %v1342_v44, %v1338_v46 }
 0x2dd   : > { %v1357_v34 = vpack.c.bf16 %v1341_v29, %v1337_v51  ;;  %v1359_v26 = vpack.c.bf16 %v1343_v61, %v1339_v53 }
 0x2df   : > { %1456 = vmatprep.subr.bf16.mxu0 %v1357_v34  ;;  %1529 = vmatprep.subr.bf16.mxu1 %v1359_v26  ;;  %v1406_v34 = vpop.permute.xlu0 %1405 }
 0x2e0   : > { %1457 = vmatpush1.bf16.msra.mxu0 %v1356_v59  ;;  %1530 = vmatpush1.bf16.msra.mxu1 %v1358_v23  ;;  %v1401_v23 = vpop.permute.xlu1 %1400 }
 0x2e3   : > { %1900 = vmatmul.mubr.msk.bf16.vlgmr.msra.gmra.mrb[32].mxu0 %vm869_vm0, %v1987_v25  ;;  %1904 = vmatmul.mubr.msk.bf16.vlgmr.msra.gmra.mrb[32].mxu1 %vm869_vm0, %v1987_v25 }
 0x2e4   : > { %1492 = vmatprep.mubr.bf16.mxu0 %v2055_v2  ;;  %1565 = vmatprep.mubr.bf16.mxu1 %v2055_v2 }
 0x2eb   : > { %1901 = vmatmul.mubr.msk.bf16.gmra.mrb[36].mxu0 %vm869_vm0, %v1988_v28  ;;  %1905 = vmatmul.mubr.msk.bf16.gmra.mrb[36].mxu1 %vm869_vm0, %v1988_v28 }
 0x2ec   : > { %1502 = vmatprep.mubr.bf16.mxu0 %v2055_v2  ;;  %1575 = vmatprep.mubr.bf16.mxu1 %v2055_v2 }
 0x2f3   : > { %1902 = vmatmul.mubr.msk.bf16.gmra.mrb[40].mxu0 %vm869_vm0, %v1989_v54  ;;  %1906 = vmatmul.mubr.msk.bf16.gmra.mrb[40].mxu1 %vm869_vm0, %v1989_v54 }
 0x2f4   : > { %1512 = vmatprep.mubr.bf16.mxu0 %v2055_v2  ;;  %1585 = vmatprep.mubr.bf16.mxu1 %v2055_v2 }
 0x2fb   : > { %1903 = vmatmul.mubr.msk.bf16.gmra.mrb[44].mxu0 %vm869_vm0, %v1990_v0  ;;  %1907 = vmatmul.mubr.msk.bf16.gmra.mrb[44].mxu1 %vm869_vm0, %v1990_v0 }
 0x2fc   : > { %1686 = vmatprep.mubr.bf16.mxu0 %v2055_v2  ;;  %1727 = vmatprep.mubr.bf16.mxu1 %v2055_v2 }
 0x3b6   : > { %v1484_v56 = vpop.f32.mrb[32].mxu0  ;;  %v1557_v57 = vpop.f32.mrb[32].mxu1 }
 0x3b7   : > { %v1485_v58 = vadd.f32 %v1484_v56, %v1381_v3  ;;  %v1558_v22 = vadd.f32 %v1557_v57, %v1381_v3  ;;  %v1486_v4 = vpop.f32.mrb[33].mxu0  ;;  %v1559_v62 = vpop.f32.mrb[33].mxu1 }
 0x3b8   : > { %v1487_v5 = vadd.f32 %v1486_v4, %v1381_v3  ;;  %v1560_v49 = vadd.f32 %v1559_v62, %v1381_v3  ;;  %v1488_v1 = vpop.f32.mrb[34].mxu0  ;;  %v1561_v9 = vpop.f32.mrb[34].mxu1 }
 0x3b9   : > { %v1489_v33 = vadd.f32 %v1488_v1, %v1386_v55  ;;  %v1562_v32 = vadd.f32 %v1561_v9, %v1386_v55  ;;  %v1490_v30 = vpop.f32.mrb[35].mxu0  ;;  %v1563_v21 = vpop.f32.mrb[35].mxu1  ;;  %v1596_v39 = vmax.f32 %v1485_v58, 0.0  ;;  %v1598_v2 = vmax.f32 %v1558_v22, 0.0 }
 0x3ba   : > { %v1491_v15 = vadd.f32 %v1490_v30, %v1386_v55  ;;  %v1564_v27 = vadd.f32 %v1563_v21, %v1386_v55  ;;  %v1597_v52 = vmax.f32 %v1487_v5, 0.0  ;;  %v1599_v7 = vmax.f32 %v1560_v49, 0.0 }
 0x3bb   : > { %v1600_v48 = vmax.f32 %v1489_v33, 0.0  ;;  %v1602_v6 = vmax.f32 %v1562_v32, 0.0 }
 0x3bc   : > { %v1601_v35 = vmax.f32 %v1491_v15, 0.0  ;;  %v1603_v47 = vmax.f32 %v1564_v27, 0.0 }
 0x3bd   : > { %v1628_v36 = vpack.c.bf16 %v1600_v48, %v1596_v39  ;;  %v1630_v11 = vpack.c.bf16 %v1602_v6, %v1598_v2 }
 0x3be   : > { %v1629_v16 = vpack.c.bf16 %v1601_v35, %v1597_v52  ;;  %v1631_v17 = vpack.c.bf16 %v1603_v47, %v1599_v7  ;;  %v1494_v24 = vpop.f32.mrb[36].mxu0  ;;  %v1567_v12 = vpop.f32.mrb[36].mxu1 }
 0x3bf   : > { %v1495_v60 = vadd.f32 %v1494_v24, %v1391_v8  ;;  %v1568_v42 = vadd.f32 %v1567_v12, %v1391_v8  ;;  %v1496_v43 = vpop.f32.mrb[37].mxu0  ;;  %v1569_v19 = vpop.f32.mrb[37].mxu1 }
 0x3c0   : > { %v1497_v50 = vadd.f32 %v1496_v43, %v1391_v8  ;;  %v1570_v13 = vadd.f32 %v1569_v19, %v1391_v8  ;;  %v1498_v20 = vpop.f32.mrb[38].mxu0  ;;  %v1571_v14 = vpop.f32.mrb[38].mxu1  ;;  %1654 = vmatprep.subr.bf16.mxu0 %v1629_v16  ;;  %1695 = vmatprep.subr.bf16.mxu1 %v1631_v17 }
 0x3c1   : > { %v1499_v10 = vadd.f32 %v1498_v20, %v1396_v45  ;;  %v1572_v41 = vadd.f32 %v1571_v14, %v1396_v45  ;;  %v1500_v40 = vpop.f32.mrb[39].mxu0  ;;  %v1573_v37 = vpop.f32.mrb[39].mxu1  ;;  %1655 = vmatpush1.bf16.msra.mxu0 %v1628_v36  ;;  %1696 = vmatpush1.bf16.msra.mxu1 %v1630_v11  ;;  %v1604_v46 = vmax.f32 %v1495_v60, 0.0  ;;  %v1606_v63 = vmax.f32 %v1568_v42, 0.0 }
 0x3c2   : > { %v1501_v18 = vadd.f32 %v1500_v40, %v1396_v45  ;;  %v1574_v38 = vadd.f32 %v1573_v37, %v1396_v45  ;;  %v1605_v53 = vmax.f32 %v1497_v50, 0.0  ;;  %v1607_v29 = vmax.f32 %v1570_v13, 0.0  ;;  %v1411_v7 = vpop.permute.xlu1 %1410  ;;  %v1416_v35 = vpop.permute.xlu0 %1415 }
 0x3c3   : > { %v1608_v44 = vmax.f32 %v1499_v10, 0.0  ;;  %v1610_v51 = vmax.f32 %v1572_v41, 0.0 }
 0x3c4   : > { %v1609_v61 = vmax.f32 %v1501_v18, 0.0  ;;  %v1611_v59 = vmax.f32 %v1574_v38, 0.0 }
 0x3c5   : > { %v1632_v26 = vpack.c.bf16 %v1608_v44, %v1604_v46  ;;  %v1634_v25 = vpack.c.bf16 %v1610_v51, %v1606_v63 }
 0x3c6   : > { %v1633_v28 = vpack.c.bf16 %v1609_v61, %v1605_v53  ;;  %v1635_v54 = vpack.c.bf16 %v1611_v59, %v1607_v29  ;;  %v1504_v0 = vpop.f32.mrb[40].mxu0  ;;  %v1577_v3 = vpop.f32.mrb[40].mxu1 }
 0x3c7   : > { %v1505_v55 = vadd.f32 %v1504_v0, %v1401_v23  ;;  %v1578_v56 = vadd.f32 %v1577_v3, %v1401_v23  ;;  %v1506_v57 = vpop.f32.mrb[41].mxu0  ;;  %v1579_v58 = vpop.f32.mrb[41].mxu1 }
 0x3c8   : > { %v1507_v22 = vadd.f32 %v1506_v57, %v1401_v23  ;;  %v1580_v4 = vadd.f32 %v1579_v58, %v1401_v23  ;;  %v1508_v62 = vpop.f32.mrb[42].mxu0  ;;  %v1581_v5 = vpop.f32.mrb[42].mxu1  ;;  %1656 = vmatprep.subr.bf16.mxu0 %v1633_v28  ;;  %1697 = vmatprep.subr.bf16.mxu1 %v1635_v54 }
 0x3c9   : > { %v1509_v49 = vadd.f32 %v1508_v62, %v1406_v34  ;;  %v1582_v1 = vadd.f32 %v1581_v5, %v1406_v34  ;;  %v1510_v9 = vpop.f32.mrb[43].mxu0  ;;  %v1583_v33 = vpop.f32.mrb[43].mxu1  ;;  %1657 = vmatpush1.bf16.msra.mxu0 %v1632_v26  ;;  %1698 = vmatpush1.bf16.msra.mxu1 %v1634_v25  ;;  %v1612_v21 = vmax.f32 %v1505_v55, 0.0  ;;  %v1614_v15 = vmax.f32 %v1578_v56, 0.0 }
 0x3ca   : > { %v1511_v32 = vadd.f32 %v1510_v9, %v1406_v34  ;;  %v1584_v30 = vadd.f32 %v1583_v33, %v1406_v34  ;;  %v1613_v2 = vmax.f32 %v1507_v22, 0.0  ;;  %v1615_v48 = vmax.f32 %v1580_v4, 0.0  ;;  %v1644_v34 = vld [vmem:[%s2680_s5] sm:$0x1]  ;;  %v1649_v54 = vpop.permute.xlu1 %1648 }
 0x3cb   : > { %v1616_v27 = vmax.f32 %v1509_v49, 0.0  ;;  %v1618_v39 = vmax.f32 %v1582_v1, 0.0  ;;  %v2058_v26 = vmov 1983009808  }
 0x3cc   : > { %v1617_v6 = vmax.f32 %v1511_v32, 0.0  ;;  %v1619_v52 = vmax.f32 %v1584_v30, 0.0  ;;  %v1743_v25 = vunpack.c.l.s4 %v2058_v26 }
 0x3cd   : > { %v1636_v47 = vpack.c.bf16 %v1616_v27, %v1612_v21  ;;  %v1638_v8 = vpack.c.bf16 %v1618_v39, %v1614_v15 }
 0x3ce   : > { %v1637_v45 = vpack.c.bf16 %v1617_v6, %v1613_v2  ;;  %v1639_v36 = vpack.c.bf16 %v1619_v52, %v1615_v48  ;;  %v1514_v11 = vpop.f32.mrb[44].mxu0  ;;  %v1587_v16 = vpop.f32.mrb[44].mxu1  ;;  %v1744_v28 = vunpack.c.0.s8 %v1743_v25 }
 0x3cf   : > { %v1515_v17 = vadd.f32 %v1514_v11, %v1411_v7  ;;  %v1588_v24 = vadd.f32 %v1587_v16, %v1411_v7  ;;  %v1516_v12 = vpop.f32.mrb[45].mxu0  ;;  %v1589_v60 = vpop.f32.mrb[45].mxu1 }
 0x3d0   : > { %v1517_v42 = vadd.f32 %v1516_v12, %v1411_v7  ;;  %v1590_v43 = vadd.f32 %v1589_v60, %v1411_v7  ;;  %v1518_v19 = vpop.f32.mrb[46].mxu0  ;;  %v1591_v50 = vpop.f32.mrb[46].mxu1  ;;  %1658 = vmatprep.subr.bf16.mxu0 %v1637_v45  ;;  %1699 = vmatprep.subr.bf16.mxu1 %v1639_v36  ;;  %v1747_v4 = vsub.s32 %v1744_v28, %v2238_v31 }
 0x3d1   : > { %v1519_v13 = vadd.f32 %v1518_v19, %v1416_v35  ;;  %v1592_v20 = vadd.f32 %v1591_v50, %v1416_v35  ;;  %v1520_v14 = vpop.f32.mrb[47].mxu0  ;;  %v1593_v10 = vpop.f32.mrb[47].mxu1  ;;  %1659 = vmatpush1.bf16.msra.mxu0 %v1636_v47  ;;  %1700 = vmatpush1.bf16.msra.mxu1 %v1638_v8  ;;  %v1620_v37 = vmax.f32 %v1515_v17, 0.0  ;;  %v1622_v18 = vmax.f32 %v1588_v24, 0.0 }
 0x3d2   : > { %v1521_v41 = vadd.f32 %v1520_v14, %v1416_v35  ;;  %v1594_v40 = vadd.f32 %v1593_v10, %v1416_v35  ;;  %v1621_v63 = vmax.f32 %v1517_v42, 0.0  ;;  %v1623_v44 = vmax.f32 %v1590_v43, 0.0 }
 0x3d3   : > { %v1624_v38 = vmax.f32 %v1519_v13, 0.0  ;;  %v1626_v46 = vmax.f32 %v1592_v20, 0.0 }
 0x3d4   : > { %v1625_v51 = vmax.f32 %v1521_v41, 0.0  ;;  %v1627_v53 = vmax.f32 %v1594_v40, 0.0 }
 0x3d5   : > { %v1640_v29 = vpack.c.bf16 %v1624_v38, %v1620_v37  ;;  %v1642_v61 = vpack.c.bf16 %v1626_v46, %v1622_v18 }
 0x3d6   : > { %v1641_v59 = vpack.c.bf16 %v1625_v51, %v1621_v63  ;;  %v1643_v23 = vpack.c.bf16 %v1627_v53, %v1623_v44 }
 0x3d8   : > { %1660 = vmatprep.subr.bf16.mxu0 %v1641_v59  ;;  %1701 = vmatprep.subr.bf16.mxu1 %v1643_v23 }
 0x3d9   : > { %1661 = vmatpush1.bf16.msra.mxu0 %v1640_v29  ;;  %1702 = vmatpush1.bf16.msra.mxu1 %v1642_v61 }
 0x3dc   : > { %1908 = vmatmul.mubr.msk.bf16.vlgmr.msra.gmra.mrb[48].mxu0 %vm869_vm0, %v1644_v34  ;;  %1909 = vmatmul.mubr.msk.bf16.vlgmr.msra.gmra.mrb[48].mxu1 %vm869_vm0, %v1644_v34 }
 0x4af   : > { %v1688_v0 = vpop.f32.mrb[48].mxu0  ;;  %v1729_v3 = vpop.f32.mrb[48].mxu1 }
 0x4b0   : > { %v1689_v55 = vadd.f32 %v1688_v0, %v1649_v54  ;;  %v1730_v56 = vadd.f32 %v1729_v3, %v1649_v54  ;;  %v1690_v57 = vpop.f32.mrb[49].mxu0  ;;  %v1731_v58 = vpop.f32.mrb[49].mxu1 }
 0x4b1   : > { %v1691_v22 = vadd.f32 %v1690_v57, %v1649_v54  ;;  %v1732_v62 = vadd.f32 %v1731_v58, %v1649_v54  ;;  %v1692_v5 = vpop.f32.mrb[50].mxu0  ;;  %v1733_v49 = vpop.f32.mrb[50].mxu1 }
 0x4b2   : > { %v1693_v1 = vpop.f32.mrb[51].mxu0  ;;  %v1734_v9 = vpop.f32.mrb[51].mxu1 }
 0x4b3   : > { %v1740_v33 = vcombine.low %v1689_v55, %v1691_v22  ;;  %v1741_v32 = vcombine.low %v1730_v56, %v1732_v62 }
 0x4b5   : > { %v1748_v30 = vrot.slane %v1740_v33, %v1747_v4  ;;  %v1755_v21 = vrot.slane %v1741_v32, %v1747_v4 }
 0x4b7   : > { %v1756_v15 = vcombine.low %v1748_v30, %v1755_v21 }
 0x4b9   : > { %1758 = vst [vmem:[%s272_s18] sm:$0xff] %v1756_v15 }
 0x4ba   : > { %2004 = shalt.err (!%p2001_p3)
}
 0x4bb   : > { %s2005_s9 = scalar_lea.hbm %s2633_s22, 128  ;;  %s2009_s15 = scalar_lea.hbm %s2682_s7, 256 }
 0x4bc   : > { %p2006_p4 = scmp.ne.s32.totalorder %s2633_s22, %s2005_s9  ;;  %p2010_p9 = scmp.lt.u32.totalorder %s2633_s22, %s2682_s7 }
 0x4bd   : > { %p2011_p10 = scmp.lt.u32.totalorder %s2009_s15, %s2005_s9  ;;  %p2013_p12 = scmp.lt.u32.totalorder %s2005_s9, %s2633_s22 }
 0x4be   : > { %p2007_p7 = pnand %p2006_p4, %p2138_p5 }
 0x4bf   : > { %p2012_p11 = por %p2011_p10, %p2010_p9 }
 0x4c0   : > { %p2008_p8 = pneg %p2007_p7 }
 0x4c1   : > { %p2014_p13 = por %p2013_p12, %p2012_p11 }
 0x4c3   : > { %p2015_p0 = pnand %p2014_p13, %p2008_p8 }
 0x4c5   : > { %2018 = shalt.err (!%p2015_p0)
}
 0x4c6   : > { %1916 = dma.vmem_to_hbm [thread:$0]  (%p2138_p5), %s2635_s19, 128, %s2633_s22, %s1760_s23  }
 0x4c7 PF: > { %p1922_p1 = scmp.ge.s32.totalorder %s2053_s27, 2  ;;  %s1786_s20 = sand.u32 1, %s2041_s24  }
 0x4c8   : > { %s1787_s21 = scalar_lea.sflag [#allocation3], %s1786_s20 }
 0x4c9   : > { %p1919_p2 = pnand %p1922_p1, %p2142_p6 }
 0x4cb   : > { %2036 = dma.done.wait (!%p1919_p2), %s1787_s21, 128  }
 0x4cc   : > { %2038 = vsyncadd (!%p1919_p2), %s1787_s21, 4294967168  ;;  %p17_p3 = scmp.ge.s32.totalorder %s2125_s30, 4   ;;  %s2685_s24 = smov %s2045_s25 }
 0x4cd   : > { %s2686_s25 = smov %s2049_s26  ;;  %s2687_s26 = smov %s2136_s10 }
 0x4ce   : > { %s2688_s27 = smov %s2125_s30  ;;  %19 = sbr.rel (!%p17_p3) target bundleno = 3 (0x3), region = 87 }
 0x4d5   :  { %1792 = vsyncpa [#allocation3], 1 }
 0x4d6   :  { %1794 = vsyncpa [#allocation3 + $0x1], 1 }

</bundles_post_ra>
